<compile_context>
chip_gen: v5e
topology: v5e:2x2
jax: 0.10.0
libtpu: 0.0.40
codegen_flags: <defaults>
</compile_context>

<pallas_src>
import functools

import jax
import jax.numpy as jnp
from jax.experimental import pallas as pl
from jax.experimental.pallas import tpu as pltpu

EPS = 1e-5


# ---------------------------------------------------------------------------
# Fused RCBlock kernel
# ---------------------------------------------------------------------------
def _rcblock_kernel(x_ref, bconv_ref, w2bd_ref, g1f_ref, g1b_ref,
                    g2f_ref, g2b_ref, gam1_ref, gam2_ref, bet2_ref, o_ref):
    # x_ref:     (N, H+4, (W+4)*Cin) input, zero-padded by 2, channel-interleaved
    # bconv_ref: (3, (W+4)*Cin, W*Cin) banded 3x3-conv matrices (per kh); the
    #            W-direction pool sum, 1/9 factor and W-ring zeroing are folded in
    # w2bd_ref:  (W*Cin, W*Cout)     block-diagonal 1x1-conv matrix
    # g1f/g2f:   (W*C, C)            lane -> channel fold (0/1)
    # g1b/g2b:   (C, W*C)            channel -> lane broadcast (0/1)
    # gam1/gam2/bet2: (1, C)         BatchNorm affine parameters
    # o_ref:     (N*H, W*Cout)       SiLU(BN2(conv1x1(BN1(conv3x3(pool(x)))))),
    #                                lane-dense
    N = x_ref.shape[0]
    Cin = gam1_ref.shape[1]
    Cout = gam2_ref.shape[1]
    H = x_ref.shape[1] - 4
    W = x_ref.shape[2] // Cin - 4
    Lx = (W + 4) * Cin
    NH = N * H
    P = N * H * W
    inv_p = 1.0 / float(P)

    x = x_ref[...]                                           # (N, H+4, Lx)

    # ---- H-direction part of the separable 3x3 sum-pool (VPU, 2 adds) ----
    q = x[:, 0:H + 2, :] + x[:, 1:H + 3, :] + x[:, 2:H + 4, :]   # (N, H+2, Lx)

    # Zero the top/bottom ring rows of the pooled map (stands in for the zero
    # padding the 3x3 conv would apply to the pooled map).  The left/right
    # ring is folded into the banded conv matrices.
    hi = jax.lax.broadcasted_iota(jnp.int32, q.shape, 1)
    qm = jnp.where((hi >= 1) & (hi <= H), q, 0.0)

    # ---- 3x3 conv (== deform_conv2d with zero offsets / unit mask) --------
    # Three banded dots, one per kh row: K = (W+4)*Cin.
    y1 = jnp.zeros((NH, W * Cin), jnp.float32)
    for kh in range(3):
        a = qm[:, kh:kh + H, :].reshape(NH, Lx)
        y1 = y1 + jnp.dot(a, bconv_ref[kh],
                          preferred_element_type=jnp.float32)

    # ---- BatchNorm2d #1: only the scale matters (beta1 and the 1x1 bias are
    #      per-channel constants that cancel exactly in BN2's centering) -----
    rs1 = jnp.sum(y1, axis=0, keepdims=True)                       # (1, W*Cin)
    mean1 = jnp.dot(rs1, g1f_ref[...],
                    preferred_element_type=jnp.float32) * inv_p    # (1, Cin)
    mean1_t = jnp.dot(mean1, g1b_ref[...],
                      preferred_element_type=jnp.float32)          # (1, W*Cin)
    d1 = y1 - mean1_t
    rq1 = jnp.sum(d1 * d1, axis=0, keepdims=True)
    var1 = jnp.dot(rq1, g1f_ref[...],
                   preferred_element_type=jnp.float32) * inv_p     # (1, Cin)
    scale1 = gam1_ref[...] * jax.lax.rsqrt(var1 + EPS)
    scale1_t = jnp.dot(scale1, g1b_ref[...],
                       preferred_element_type=jnp.float32)         # (1, W*Cin)

    # ---- weight_conv2: 1x1 conv as one block-diagonal dot (bias cancels) ---
    z = jnp.dot(d1 * scale1_t, w2bd_ref[...],
                preferred_element_type=jnp.float32)                # (NH, W*Cout)

    # ---- BatchNorm2d #2 + SiLU ---------------------------------------------
    rs2 = jnp.sum(z, axis=0, keepdims=True)
    mean2 = jnp.dot(rs2, g2f_ref[...],
                    preferred_element_type=jnp.float32) * inv_p    # (1, Cout)
    mean2_t = jnp.dot(mean2, g2b_ref[...],
                      preferred_element_type=jnp.float32)          # (1, W*Cout)
    d2 = z - mean2_t
    rq2 = jnp.sum(d2 * d2, axis=0, keepdims=True)
    var2 = jnp.dot(rq2, g2f_ref[...],
                   preferred_element_type=jnp.float32) * inv_p     # (1, Cout)
    scale2 = gam2_ref[...] * jax.lax.rsqrt(var2 + EPS)
    scale2_t = jnp.dot(scale2, g2b_ref[...],
                       preferred_element_type=jnp.float32)         # (1, W*Cout)
    bet2_t = jnp.dot(bet2_ref[...], g2b_ref[...],
                     preferred_element_type=jnp.float32)           # (1, W*Cout)

    zn = d2 * scale2_t + bet2_t
    o_ref[...] = (zn * jax.nn.sigmoid(zn)).astype(o_ref.dtype)


def _full_spec(shape):
    rank = len(shape)
    return pl.BlockSpec(shape, lambda i: (0,) * rank)


def _rcblock_pallas(xint, bconv, w2bd, g1f, g1b, g2f, g2b, gam1, gam2, bet2):
    N, hp4, lx = xint.shape
    Cin = gam1.shape[1]
    Cout = gam2.shape[1]
    H = hp4 - 4
    W = lx // Cin - 4
    args = (xint, bconv, w2bd, g1f, g1b, g2f, g2b, gam1, gam2, bet2)
    return pl.pallas_call(
        _rcblock_kernel,
        out_shape=jax.ShapeDtypeStruct((N * H, W * Cout), jnp.float32),
        grid=(1,),
        in_specs=[_full_spec(a.shape) for a in args],
        out_specs=pl.BlockSpec((N * H, W * Cout), lambda i: (0, 0)),
        compiler_params=pltpu.CompilerParams(
            dimension_semantics=("arbitrary",),
            vmem_limit_bytes=32 * 1024 * 1024),
    )(*args)


# ---------------------------------------------------------------------------
# Glue
# ---------------------------------------------------------------------------
def init_params(key, cin, cout):
    k1, k2, k3 = jax.random.split(key, 3)
    # regular_conv (torch OIHW (cin, cin, 3, 3), bias=False) -> (kh, kw, ci, co)
    wreg_oihw = 0.1 * jax.random.normal(k1, (cin, cin, 3, 3), jnp.float32)
    wreg = jnp.transpose(wreg_oihw, (2, 3, 1, 0))
    # offset_conv / modulator_conv: constant-zero init (per module __init__)
    offset_w = jnp.zeros((2 * 9, cin, 3, 3), jnp.float32)
    offset_b = jnp.zeros((2 * 9,), jnp.float32)
    mod_w = jnp.zeros((9, cin, 3, 3), jnp.float32)
    mod_b = jnp.zeros((9,), jnp.float32)
    # weight_conv2: 1x1 conv (cout, cin, 1, 1) + bias
    w2_oihw = 0.1 * jax.random.normal(k2, (cout, cin, 1, 1), jnp.float32)
    w2 = jnp.transpose(w2_oihw[:, :, 0, 0], (1, 0))           # (cin, cout)
    b2 = 0.1 * jax.random.normal(k3, (cout,), jnp.float32)
    return dict(
        wreg=wreg, w2=w2, b2=b2,                      # b2 cancels in BN2 (unused)
        offset_w=offset_w, offset_b=offset_b, mod_w=mod_w, mod_b=mod_b,
        bn1_gamma=jnp.ones((cin,), jnp.float32),
        bn1_beta=jnp.zeros((cin,), jnp.float32),      # cancels in BN2 (unused)
        bn2_gamma=jnp.ones((cout,), jnp.float32),
        bn2_beta=jnp.zeros((cout,), jnp.float32),
    )


def check_deform_specialization(params):
    """Runtime guard: the kernel specializes deform_conv2d to its zero-offset,
    unit-mask form, which is exact for the module's constant-zero initialized
    offset_conv / modulator_conv."""
    # TODO(synk): bilinear sampling for non-zero offsets / a non-unit modulated
    # mask is not implemented in the Pallas kernel.
    for name in ("offset_w", "offset_b", "mod_w", "mod_b"):
        if bool(jnp.any(params[name] != 0)):
            raise NotImplementedError(
                f"non-zero {name}: general deform_conv2d path is not implemented")


@jax.jit
def rcblock_forward(x_nchw, params):
    # NCHW -> NHWC, single zero-pad by 2 (reused for the pool halo AND the
    # conv halo), then interleave channels into the lane axis.
    x = jnp.transpose(x_nchw, (0, 2, 3, 1)).astype(jnp.float32)
    N, H, W, Cin = x.shape
    Cout = params["w2"].shape[-1]
    xp = jnp.pad(x, ((0, 0), (2, 2), (2, 2), (0, 0)))
    xint = xp.reshape(N, H + 4, (W + 4) * Cin)

    # Banded 3x3-conv matrices (one per kh): fold in the W-direction pool sum,
    # the 1/9 avg-pool factor and the pooled-map zero ring in W.
    lv = jnp.arange(W + 4)[None, None, :, None]
    wo = jnp.arange(W)[None, None, None, :]
    kw = jnp.arange(3)[:, None, None, None]
    bb = jnp.arange(3)[None, :, None, None]
    hit = (lv == wo + kw + bb) & (wo + kw >= 1) & (wo + kw <= W)
    cnt = jnp.sum(hit.astype(jnp.float32), axis=1)            # (3, W+4, W)
    bconv = jnp.einsum("kuw,hkio->huiwo", cnt, params["wreg"]) / 9.0
    bconv = bconv.reshape(3, (W + 4) * Cin, W * Cin)

    # Block-diagonal 1x1-conv matrix for the channel-interleaved layout.
    w2bd = jnp.einsum("uw,io->uiwo", jnp.eye(W, dtype=jnp.float32),
                      params["w2"]).reshape(W * Cin, W * Cout)

    # Tiny 0/1 fold (lane -> channel) / broadcast (channel -> lane) matrices.
    g1f = jnp.tile(jnp.eye(Cin, dtype=jnp.float32), (W, 1))   # (W*Cin, Cin)
    g2f = jnp.tile(jnp.eye(Cout, dtype=jnp.float32), (W, 1))  # (W*Cout, Cout)

    out2d = _rcblock_pallas(
        xint, bconv, w2bd, g1f, g1f.T, g2f, g2f.T,
        params["bn1_gamma"][None, :],
        params["bn2_gamma"][None, :],
        params["bn2_beta"][None, :])

    out = out2d.reshape(N, H, W, Cout)
    return jnp.transpose(out, (0, 3, 1, 2))                   # back to NCHW


if __name__ == "__main__":
    key = jax.random.PRNGKey(0)
    kx, kp = jax.random.split(key)

    N, Cin, Cout, H, W = 2, 4, 8, 16, 16
    x = jax.random.normal(kx, (N, Cin, H, W), jnp.float32)    # NCHW, like PyTorch
    params = init_params(kp, Cin, Cout)

    check_deform_specialization(params)
    out = jax.block_until_ready(rcblock_forward(x, params))
    assert out.shape == (N, Cout, H, W)
    assert bool(jnp.all(jnp.isfinite(out)))
    print("KERNEL_OK")
</pallas_src>

<mosaic_0001>
module attributes {stable_mosaic.version = 11 : i64} {
  func.func @_rcblock_kernel(%arg0: i32, %arg1: memref<2x20x80xf32, #tpu.memory_space<vmem>>, %arg2: memref<3x80x64xf32, #tpu.memory_space<vmem>>, %arg3: memref<64x128xf32, #tpu.memory_space<vmem>>, %arg4: memref<64x4xf32, #tpu.memory_space<vmem>>, %arg5: memref<4x64xf32, #tpu.memory_space<vmem>>, %arg6: memref<128x8xf32, #tpu.memory_space<vmem>>, %arg7: memref<8x128xf32, #tpu.memory_space<vmem>>, %arg8: memref<1x4xf32, #tpu.memory_space<vmem>>, %arg9: memref<1x8xf32, #tpu.memory_space<vmem>>, %arg10: memref<1x8xf32, #tpu.memory_space<vmem>>, %arg11: memref<32x128xf32, #tpu.memory_space<vmem>>) attributes {dimension_semantics = [#tpu.dimension_semantics<arbitrary>], iteration_bounds = array<i64: 1>, scalar_prefetch = 0 : i64, scratch_operands = 0 : i64, tpu.core_type = #tpu.core_type<tc>, window_params = [{pipeline_mode = #tpu.pipeline_mode<synchronous>, transform_indices = @transform_0, window_bounds = array<i64: 2, 20, 80>}, {pipeline_mode = #tpu.pipeline_mode<synchronous>, transform_indices = @transform_1, window_bounds = array<i64: 3, 80, 64>}, {pipeline_mode = #tpu.pipeline_mode<synchronous>, transform_indices = @transform_2, window_bounds = array<i64: 64, 128>}, {pipeline_mode = #tpu.pipeline_mode<synchronous>, transform_indices = @transform_3, window_bounds = array<i64: 64, 4>}, {pipeline_mode = #tpu.pipeline_mode<synchronous>, transform_indices = @transform_4, window_bounds = array<i64: 4, 64>}, {pipeline_mode = #tpu.pipeline_mode<synchronous>, transform_indices = @transform_5, window_bounds = array<i64: 128, 8>}, {pipeline_mode = #tpu.pipeline_mode<synchronous>, transform_indices = @transform_6, window_bounds = array<i64: 8, 128>}, {pipeline_mode = #tpu.pipeline_mode<synchronous>, transform_indices = @transform_7, window_bounds = array<i64: 1, 4>}, {pipeline_mode = #tpu.pipeline_mode<synchronous>, transform_indices = @transform_8, window_bounds = array<i64: 1, 8>}, {pipeline_mode = #tpu.pipeline_mode<synchronous>, transform_indices = @transform_9, window_bounds = array<i64: 1, 8>}, {pipeline_mode = #tpu.pipeline_mode<synchronous>, transform_indices = @transform_10, window_bounds = array<i64: 32, 128>}]} {
    %c0 = arith.constant 0 : index
    %c0_0 = arith.constant 0 : index
    %c0_1 = arith.constant 0 : index
    %0 = vector.load %arg1[%c0, %c0_0, %c0_1] : memref<2x20x80xf32, #tpu.memory_space<vmem>>, vector<2x20x80xf32>
    %1 = vector.extract_strided_slice %0 {offsets = [0, 0, 0], sizes = [2, 18, 80], strides = [1, 1, 1]} : vector<2x20x80xf32> to vector<2x18x80xf32>
    %2 = vector.extract_strided_slice %0 {offsets = [0, 1, 0], sizes = [2, 18, 80], strides = [1, 1, 1]} : vector<2x20x80xf32> to vector<2x18x80xf32>
    %3 = arith.addf %1, %2 : vector<2x18x80xf32>
    %4 = vector.extract_strided_slice %0 {offsets = [0, 2, 0], sizes = [2, 18, 80], strides = [1, 1, 1]} : vector<2x20x80xf32> to vector<2x18x80xf32>
    %5 = arith.addf %3, %4 : vector<2x18x80xf32>
    %6 = tpu.iota {dimensions = array<i32: 1>} : vector<2x18x80xi32>
    %c1_i32 = arith.constant 1 : i32
    %7 = vector.broadcast %c1_i32 : i32 to vector<2x18x80xi32>
    %8 = arith.cmpi sge, %6, %7 : vector<2x18x80xi32>
    %c16_i32 = arith.constant 16 : i32
    %9 = vector.broadcast %c16_i32 : i32 to vector<2x18x80xi32>
    %10 = arith.cmpi sle, %6, %9 : vector<2x18x80xi32>
    %11 = arith.andi %8, %10 : vector<2x18x80xi1>
    %cst = arith.constant 0.000000e+00 : f32
    %12 = vector.broadcast %cst : f32 to vector<2x18x80xf32>
    %13 = arith.select %11, %5, %12 : vector<2x18x80xi1>, vector<2x18x80xf32>
    %cst_2 = arith.constant 0.000000e+00 : f32
    %14 = vector.broadcast %cst_2 : f32 to vector<32x64xf32>
    %15 = vector.extract_strided_slice %13 {offsets = [0, 0, 0], sizes = [2, 16, 80], strides = [1, 1, 1]} : vector<2x18x80xf32> to vector<2x16x80xf32>
    %16 = vector.shape_cast %15 : vector<2x16x80xf32> to vector<32x80xf32>
    %c0_3 = arith.constant 0 : index
    %c0_4 = arith.constant 0 : index
    %c0_5 = arith.constant 0 : index
    %17 = vector.load %arg2[%c0_3, %c0_4, %c0_5] : memref<3x80x64xf32, #tpu.memory_space<vmem>>, vector<1x80x64xf32>
    %18 = vector.shape_cast %17 : vector<1x80x64xf32> to vector<80x64xf32>
    %cst_6 = arith.constant dense<0.000000e+00> : vector<32x64xf32>
    %19 = tpu.matmul %16, %18, %cst_6 {dimension_numbers = #tpu.dot_dimension_numbers<[1], [0], [0], [1], [0, 0, 1, 1], [], []>} : vector<32x80xf32>, vector<80x64xf32>, vector<32x64xf32> -> vector<32x64xf32>
    %20 = arith.addf %14, %19 : vector<32x64xf32>
    %21 = vector.extract_strided_slice %13 {offsets = [0, 1, 0], sizes = [2, 16, 80], strides = [1, 1, 1]} : vector<2x18x80xf32> to vector<2x16x80xf32>
    %22 = vector.shape_cast %21 : vector<2x16x80xf32> to vector<32x80xf32>
    %c1 = arith.constant 1 : index
    %c0_7 = arith.constant 0 : index
    %c0_8 = arith.constant 0 : index
    %23 = vector.load %arg2[%c1, %c0_7, %c0_8] : memref<3x80x64xf32, #tpu.memory_space<vmem>>, vector<1x80x64xf32>
    %24 = vector.shape_cast %23 : vector<1x80x64xf32> to vector<80x64xf32>
    %cst_9 = arith.constant dense<0.000000e+00> : vector<32x64xf32>
    %25 = tpu.matmul %22, %24, %cst_9 {dimension_numbers = #tpu.dot_dimension_numbers<[1], [0], [0], [1], [0, 0, 1, 1], [], []>} : vector<32x80xf32>, vector<80x64xf32>, vector<32x64xf32> -> vector<32x64xf32>
    %26 = arith.addf %20, %25 : vector<32x64xf32>
    %27 = vector.extract_strided_slice %13 {offsets = [0, 2, 0], sizes = [2, 16, 80], strides = [1, 1, 1]} : vector<2x18x80xf32> to vector<2x16x80xf32>
    %28 = vector.shape_cast %27 : vector<2x16x80xf32> to vector<32x80xf32>
    %c2 = arith.constant 2 : index
    %c0_10 = arith.constant 0 : index
    %c0_11 = arith.constant 0 : index
    %29 = vector.load %arg2[%c2, %c0_10, %c0_11] : memref<3x80x64xf32, #tpu.memory_space<vmem>>, vector<1x80x64xf32>
    %30 = vector.shape_cast %29 : vector<1x80x64xf32> to vector<80x64xf32>
    %cst_12 = arith.constant dense<0.000000e+00> : vector<32x64xf32>
    %31 = tpu.matmul %28, %30, %cst_12 {dimension_numbers = #tpu.dot_dimension_numbers<[1], [0], [0], [1], [0, 0, 1, 1], [], []>} : vector<32x80xf32>, vector<80x64xf32>, vector<32x64xf32> -> vector<32x64xf32>
    %32 = arith.addf %26, %31 : vector<32x64xf32>
    %cst_13 = arith.constant dense<0.000000e+00> : vector<64xf32>
    %33 = vector.multi_reduction <add>, %32, %cst_13 [0] : vector<32x64xf32> to vector<64xf32>
    %34 = vector.shape_cast %33 : vector<64xf32> to vector<1x64xf32>
    %c0_14 = arith.constant 0 : index
    %c0_15 = arith.constant 0 : index
    %35 = vector.load %arg4[%c0_14, %c0_15] : memref<64x4xf32, #tpu.memory_space<vmem>>, vector<64x4xf32>
    %cst_16 = arith.constant dense<0.000000e+00> : vector<1x4xf32>
    %36 = tpu.matmul %34, %35, %cst_16 {dimension_numbers = #tpu.dot_dimension_numbers<[1], [0], [0], [1], [0, 0, 1, 1], [], []>} : vector<1x64xf32>, vector<64x4xf32>, vector<1x4xf32> -> vector<1x4xf32>
    %cst_17 = arith.constant 0.001953125 : f32
    %37 = vector.broadcast %cst_17 : f32 to vector<1x4xf32>
    %38 = arith.mulf %36, %37 : vector<1x4xf32>
    %c0_18 = arith.constant 0 : index
    %c0_19 = arith.constant 0 : index
    %39 = vector.load %arg5[%c0_18, %c0_19] : memref<4x64xf32, #tpu.memory_space<vmem>>, vector<4x64xf32>
    %cst_20 = arith.constant dense<0.000000e+00> : vector<1x64xf32>
    %40 = tpu.matmul %38, %39, %cst_20 {dimension_numbers = #tpu.dot_dimension_numbers<[1], [0], [0], [1], [0, 0, 1, 1], [], []>} : vector<1x4xf32>, vector<4x64xf32>, vector<1x64xf32> -> vector<1x64xf32>
    %41 = vector.broadcast %40 : vector<1x64xf32> to vector<32x64xf32>
    %42 = arith.subf %32, %41 : vector<32x64xf32>
    %43 = arith.mulf %42, %42 : vector<32x64xf32>
    %cst_21 = arith.constant dense<0.000000e+00> : vector<64xf32>
    %44 = vector.multi_reduction <add>, %43, %cst_21 [0] : vector<32x64xf32> to vector<64xf32>
    %45 = vector.shape_cast %44 : vector<64xf32> to vector<1x64xf32>
    %c0_22 = arith.constant 0 : index
    %c0_23 = arith.constant 0 : index
    %46 = vector.load %arg4[%c0_22, %c0_23] : memref<64x4xf32, #tpu.memory_space<vmem>>, vector<64x4xf32>
    %cst_24 = arith.constant dense<0.000000e+00> : vector<1x4xf32>
    %47 = tpu.matmul %45, %46, %cst_24 {dimension_numbers = #tpu.dot_dimension_numbers<[1], [0], [0], [1], [0, 0, 1, 1], [], []>} : vector<1x64xf32>, vector<64x4xf32>, vector<1x4xf32> -> vector<1x4xf32>
    %cst_25 = arith.constant 0.001953125 : f32
    %48 = vector.broadcast %cst_25 : f32 to vector<1x4xf32>
    %49 = arith.mulf %47, %48 : vector<1x4xf32>
    %c0_26 = arith.constant 0 : index
    %c0_27 = arith.constant 0 : index
    %50 = vector.load %arg8[%c0_26, %c0_27] : memref<1x4xf32, #tpu.memory_space<vmem>>, vector<1x4xf32>
    %cst_28 = arith.constant 9.99999974E-6 : f32
    %51 = vector.broadcast %cst_28 : f32 to vector<1x4xf32>
    %52 = arith.addf %49, %51 : vector<1x4xf32>
    %53 = math.rsqrt %52 : vector<1x4xf32>
    %54 = arith.mulf %50, %53 : vector<1x4xf32>
    %c0_29 = arith.constant 0 : index
    %c0_30 = arith.constant 0 : index
    %55 = vector.load %arg5[%c0_29, %c0_30] : memref<4x64xf32, #tpu.memory_space<vmem>>, vector<4x64xf32>
    %cst_31 = arith.constant dense<0.000000e+00> : vector<1x64xf32>
    %56 = tpu.matmul %54, %55, %cst_31 {dimension_numbers = #tpu.dot_dimension_numbers<[1], [0], [0], [1], [0, 0, 1, 1], [], []>} : vector<1x4xf32>, vector<4x64xf32>, vector<1x64xf32> -> vector<1x64xf32>
    %57 = vector.broadcast %56 : vector<1x64xf32> to vector<32x64xf32>
    %58 = arith.mulf %42, %57 : vector<32x64xf32>
    %c0_32 = arith.constant 0 : index
    %c0_33 = arith.constant 0 : index
    %59 = vector.load %arg3[%c0_32, %c0_33] : memref<64x128xf32, #tpu.memory_space<vmem>>, vector<64x128xf32>
    %cst_34 = arith.constant dense<0.000000e+00> : vector<32x128xf32>
    %60 = tpu.matmul %58, %59, %cst_34 {dimension_numbers = #tpu.dot_dimension_numbers<[1], [0], [0], [1], [0, 0, 1, 1], [], []>} : vector<32x64xf32>, vector<64x128xf32>, vector<32x128xf32> -> vector<32x128xf32>
    %cst_35 = arith.constant dense<0.000000e+00> : vector<128xf32>
    %61 = vector.multi_reduction <add>, %60, %cst_35 [0] : vector<32x128xf32> to vector<128xf32>
    %62 = vector.shape_cast %61 : vector<128xf32> to vector<1x128xf32>
    %c0_36 = arith.constant 0 : index
    %c0_37 = arith.constant 0 : index
    %63 = vector.load %arg6[%c0_36, %c0_37] : memref<128x8xf32, #tpu.memory_space<vmem>>, vector<128x8xf32>
    %cst_38 = arith.constant dense<0.000000e+00> : vector<1x8xf32>
    %64 = tpu.matmul %62, %63, %cst_38 {dimension_numbers = #tpu.dot_dimension_numbers<[1], [0], [0], [1], [0, 0, 1, 1], [], []>} : vector<1x128xf32>, vector<128x8xf32>, vector<1x8xf32> -> vector<1x8xf32>
    %cst_39 = arith.constant 0.001953125 : f32
    %65 = vector.broadcast %cst_39 : f32 to vector<1x8xf32>
    %66 = arith.mulf %64, %65 : vector<1x8xf32>
    %c0_40 = arith.constant 0 : index
    %c0_41 = arith.constant 0 : index
    %67 = vector.load %arg7[%c0_40, %c0_41] : memref<8x128xf32, #tpu.memory_space<vmem>>, vector<8x128xf32>
    %cst_42 = arith.constant dense<0.000000e+00> : vector<1x128xf32>
    %68 = tpu.matmul %66, %67, %cst_42 {dimension_numbers = #tpu.dot_dimension_numbers<[1], [0], [0], [1], [0, 0, 1, 1], [], []>} : vector<1x8xf32>, vector<8x128xf32>, vector<1x128xf32> -> vector<1x128xf32>
    %69 = vector.broadcast %68 : vector<1x128xf32> to vector<32x128xf32>
    %70 = arith.subf %60, %69 : vector<32x128xf32>
    %71 = arith.mulf %70, %70 : vector<32x128xf32>
    %cst_43 = arith.constant dense<0.000000e+00> : vector<128xf32>
    %72 = vector.multi_reduction <add>, %71, %cst_43 [0] : vector<32x128xf32> to vector<128xf32>
    %73 = vector.shape_cast %72 : vector<128xf32> to vector<1x128xf32>
    %c0_44 = arith.constant 0 : index
    %c0_45 = arith.constant 0 : index
    %74 = vector.load %arg6[%c0_44, %c0_45] : memref<128x8xf32, #tpu.memory_space<vmem>>, vector<128x8xf32>
    %cst_46 = arith.constant dense<0.000000e+00> : vector<1x8xf32>
    %75 = tpu.matmul %73, %74, %cst_46 {dimension_numbers = #tpu.dot_dimension_numbers<[1], [0], [0], [1], [0, 0, 1, 1], [], []>} : vector<1x128xf32>, vector<128x8xf32>, vector<1x8xf32> -> vector<1x8xf32>
    %cst_47 = arith.constant 0.001953125 : f32
    %76 = vector.broadcast %cst_47 : f32 to vector<1x8xf32>
    %77 = arith.mulf %75, %76 : vector<1x8xf32>
    %c0_48 = arith.constant 0 : index
    %c0_49 = arith.constant 0 : index
    %78 = vector.load %arg9[%c0_48, %c0_49] : memref<1x8xf32, #tpu.memory_space<vmem>>, vector<1x8xf32>
    %cst_50 = arith.constant 9.99999974E-6 : f32
    %79 = vector.broadcast %cst_50 : f32 to vector<1x8xf32>
    %80 = arith.addf %77, %79 : vector<1x8xf32>
    %81 = math.rsqrt %80 : vector<1x8xf32>
    %82 = arith.mulf %78, %81 : vector<1x8xf32>
    %c0_51 = arith.constant 0 : index
    %c0_52 = arith.constant 0 : index
    %83 = vector.load %arg7[%c0_51, %c0_52] : memref<8x128xf32, #tpu.memory_space<vmem>>, vector<8x128xf32>
    %cst_53 = arith.constant dense<0.000000e+00> : vector<1x128xf32>
    %84 = tpu.matmul %82, %83, %cst_53 {dimension_numbers = #tpu.dot_dimension_numbers<[1], [0], [0], [1], [0, 0, 1, 1], [], []>} : vector<1x8xf32>, vector<8x128xf32>, vector<1x128xf32> -> vector<1x128xf32>
    %c0_54 = arith.constant 0 : index
    %c0_55 = arith.constant 0 : index
    %85 = vector.load %arg10[%c0_54, %c0_55] : memref<1x8xf32, #tpu.memory_space<vmem>>, vector<1x8xf32>
    %c0_56 = arith.constant 0 : index
    %c0_57 = arith.constant 0 : index
    %86 = vector.load %arg7[%c0_56, %c0_57] : memref<8x128xf32, #tpu.memory_space<vmem>>, vector<8x128xf32>
    %cst_58 = arith.constant dense<0.000000e+00> : vector<1x128xf32>
    %87 = tpu.matmul %85, %86, %cst_58 {dimension_numbers = #tpu.dot_dimension_numbers<[1], [0], [0], [1], [0, 0, 1, 1], [], []>} : vector<1x8xf32>, vector<8x128xf32>, vector<1x128xf32> -> vector<1x128xf32>
    %88 = vector.broadcast %84 : vector<1x128xf32> to vector<32x128xf32>
    %89 = arith.mulf %70, %88 : vector<32x128xf32>
    %90 = vector.broadcast %87 : vector<1x128xf32> to vector<32x128xf32>
    %91 = arith.addf %89, %90 : vector<32x128xf32>
    %92 = arith.negf %91 : vector<32x128xf32>
    %93 = math.exp %92 : vector<32x128xf32>
    %cst_59 = arith.constant 1.000000e+00 : f32
    %94 = vector.broadcast %cst_59 : f32 to vector<32x128xf32>
    %95 = arith.addf %94, %93 : vector<32x128xf32>
    %96 = arith.divf %94, %95 : vector<32x128xf32>
    %97 = arith.mulf %91, %96 : vector<32x128xf32>
    %c0_60 = arith.constant 0 : index
    %c0_61 = arith.constant 0 : index
    %98 = vector.load %arg11[%c0_60, %c0_61] : memref<32x128xf32, #tpu.memory_space<vmem>>, vector<32x128xf32>
    tpu.vector_store %arg11[%c0_60, %c0_61], %97 {strides = array<i32>} : memref<32x128xf32, #tpu.memory_space<vmem>>, vector<32x128xf32>,
    return
  }
  func.func @transform_0(%arg0: i32) -> (i32, i32, i32) {
    %c0_i32 = arith.constant 0 : i32
    %c0_i32_0 = arith.constant 0 : i32
    %c0_i32_1 = arith.constant 0 : i32
    %c0_i32_2 = arith.constant 0 : i32
    return %c0_i32, %c0_i32_0, %c0_i32_1 : i32, i32, i32
  }
  func.func @transform_1(%arg0: i32) -> (i32, i32, i32) {
    %c0_i32 = arith.constant 0 : i32
    %c0_i32_0 = arith.constant 0 : i32
    %c0_i32_1 = arith.constant 0 : i32
    %c0_i32_2 = arith.constant 0 : i32
    return %c0_i32, %c0_i32_0, %c0_i32_1 : i32, i32, i32
  }
  func.func @transform_2(%arg0: i32) -> (i32, i32) {
    %c0_i32 = arith.constant 0 : i32
    %c0_i32_0 = arith.constant 0 : i32
    %c0_i32_1 = arith.constant 0 : i32
    return %c0_i32, %c0_i32_0 : i32, i32
  }
  func.func @transform_3(%arg0: i32) -> (i32, i32) {
    %c0_i32 = arith.constant 0 : i32
    %c0_i32_0 = arith.constant 0 : i32
    %c0_i32_1 = arith.constant 0 : i32
    return %c0_i32, %c0_i32_0 : i32, i32
  }
  func.func @transform_4(%arg0: i32) -> (i32, i32) {
    %c0_i32 = arith.constant 0 : i32
    %c0_i32_0 = arith.constant 0 : i32
    %c0_i32_1 = arith.constant 0 : i32
    return %c0_i32, %c0_i32_0 : i32, i32
  }
  func.func @transform_5(%arg0: i32) -> (i32, i32) {
    %c0_i32 = arith.constant 0 : i32
    %c0_i32_0 = arith.constant 0 : i32
    %c0_i32_1 = arith.constant 0 : i32
    return %c0_i32, %c0_i32_0 : i32, i32
  }
  func.func @transform_6(%arg0: i32) -> (i32, i32) {
    %c0_i32 = arith.constant 0 : i32
    %c0_i32_0 = arith.constant 0 : i32
    %c0_i32_1 = arith.constant 0 : i32
    return %c0_i32, %c0_i32_0 : i32, i32
  }
  func.func @transform_7(%arg0: i32) -> (i32, i32) {
    %c0_i32 = arith.constant 0 : i32
    %c0_i32_0 = arith.constant 0 : i32
    %c0_i32_1 = arith.constant 0 : i32
    return %c0_i32, %c0_i32_0 : i32, i32
  }
  func.func @transform_8(%arg0: i32) -> (i32, i32) {
    %c0_i32 = arith.constant 0 : i32
    %c0_i32_0 = arith.constant 0 : i32
    %c0_i32_1 = arith.constant 0 : i32
    return %c0_i32, %c0_i32_0 : i32, i32
  }
  func.func @transform_9(%arg0: i32) -> (i32, i32) {
    %c0_i32 = arith.constant 0 : i32
    %c0_i32_0 = arith.constant 0 : i32
    %c0_i32_1 = arith.constant 0 : i32
    return %c0_i32, %c0_i32_0 : i32, i32
  }
  func.func @transform_10(%arg0: i32) -> (i32, i32) {
    %c0_i32 = arith.constant 0 : i32
    %c0_i32_0 = arith.constant 0 : i32
    %c0_i32_1 = arith.constant 0 : i32
    return %c0_i32, %c0_i32_0 : i32, i32
  }
}

</mosaic_0001>

<bundles_post_ra>
// kernel: tile.14
= control target key start
LH: loop header
LB: loop body
LE: loop exit
PB: predicated region body
PF: predicated region fallthrough
CT: control target
= control target key end

     0   :  { %vm6_vm0 = vcmask 1043458   ;;  %s11_s6 = smov 3  ;;  %s14_s7 = smov 12  ;;  %vm8_vm1 = vcmask 31744   ;;  %vm20_vm2 = vcmask 523744   ;;  %vm32_vm3 = vcmask 490944   ;;  %s381_s0 = inlined_call_operand.vmem [shape: f32[16,4,4], index: 0, kind: input, shape index: {}]   ;;  %s382_s1 = inlined_call_operand.vmem [shape: f32[64,4], index: 1, kind: output, shape index: {}]  }
   0x1   :  { %v196_v0 = vld [vmem:[%s381_s0 + $0xf] ss:$16 sm:%s11_s6]   ;;  %s35_s12 = smov 3  ;;  %s38_s15 = smov 12  ;;  %vm44_vm4 = vcmask 458144   ;;  %vm56_vm5 = vcmask 425344  }
   0x2   :  { %v197_v1 = vld [vmem:[%s381_s0 + $0xf] ss:$16 sm:%s14_s7]   ;;  %v200_v3 = vld [vmem:[%s381_s0 + $0xd] ss:$16 sm:%s35_s12]   ;;  %s241_s16 = smov 60   ;;  %s23_s19 = smov 3 }
   0x3   :  { %v17_v2 = vsel %vm6_vm0, %v197_v1, %v196_v0  ;;  %v201_v4 = vld [vmem:[%s381_s0 + $0xd] ss:$16 sm:%s38_s15]   ;;  %s26_s20 = smov 12  ;;  %v198_v6 = vld [vmem:[%s381_s0 + $0xe] ss:$16 sm:%s23_s19]   ;;  %s47_s23 = smov 3 }
   0x4   :  { %18 = vrot.lane.b32.xlu0 %v17_v2, %s241_s16  ;;  %v41_v5 = vsel %vm6_vm0, %v201_v4, %v200_v3  ;;  %s242_s24 = smov 52   ;;  %v199_v7 = vld [vmem:[%s381_s0 + $0xe] ss:$16 sm:%s26_s20]   ;;  %s50_s27 = smov 12  ;;  %vm68_vm6 = vcmask 392544   ;;  %vm80_vm7 = vcmask 359744  }
   0x5   :  { %42 = vrot.lane.b32.xlu1 %v41_v5, %s242_s24  ;;  %v202_v8 = vld [vmem:[%s381_s0 + $0xc] ss:$16 sm:%s47_s23]   ;;  %v29_v10 = vsel %vm6_vm0, %v199_v7, %v198_v6  ;;  %s83_s3 = smov 3  ;;  %s86_s4 = smov 12  ;;  %vm92_vm8 = vcmask 326944   ;;  %vm104_vm9 = vcmask 294144  }
   0x6   :  { %v203_v9 = vld [vmem:[%s381_s0 + $0xc] ss:$16 sm:%s50_s27]   ;;  %s243_s5 = smov 56   ;;  %s95_s6 = smov 3  ;;  %v208_v12 = vld [vmem:[%s381_s0 + $0x9] ss:$16 sm:%s83_s3]  }
   0x7   :  { %v53_v11 = vsel %vm6_vm0, %v203_v9, %v202_v8  ;;  %s98_s7 = smov 12  ;;  %v209_v13 = vld [vmem:[%s381_s0 + $0x9] ss:$16 sm:%s86_s4]   ;;  %s59_s12 = smov 3  ;;  %v210_v16 = vld [vmem:[%s381_s0 + $0x8] ss:$16 sm:%s95_s6]  }
   0x8   :  { %s62_s13 = smov 12  ;;  %s244_s14 = smov 48   ;;  %v204_v14 = vld [vmem:[%s381_s0 + $0xb] ss:$16 sm:%s59_s12]   ;;  %v211_v17 = vld [vmem:[%s381_s0 + $0x8] ss:$16 sm:%s98_s7]   ;;  %v89_v19 = vsel %vm6_vm0, %v209_v13, %v208_v12 }
   0x9   :  { %v205_v15 = vld [vmem:[%s381_s0 + $0xb] ss:$16 sm:%s62_s13]   ;;  %s245_s23 = smov 44   ;;  %s71_s24 = smov 3  ;;  %v101_v20 = vsel %vm6_vm0, %v211_v17, %v210_v16  ;;  %vm116_vm10 = vcmask 261344   ;;  %vm128_vm11 = vcmask 228544  }
   0xa   :  { %v65_v18 = vsel %vm6_vm0, %v205_v15, %v204_v14  ;;  %s119_s25 = smov 3  ;;  %s74_s26 = smov 12  ;;  %v206_v21 = vld [vmem:[%s381_s0 + $0xa] ss:$16 sm:%s71_s24]   ;;  %vm140_vm12 = vcmask 195744   ;;  %vm152_vm13 = vcmask 162944  }
   0xb   :  { %66 = vrot.lane.b32.xlu2 %v65_v18, %s245_s23  ;;  %s122_s27 = smov 12  ;;  %v207_v22 = vld [vmem:[%s381_s0 + $0xa] ss:$16 sm:%s74_s26]   ;;  %s246_s3 = smov 36   ;;  %vm164_vm14 = vcmask 130144   ;;  %vm176_vm15 = vcmask 97344  }
   0xc   :  { %30 = vrot.lane.b32.xlu0 %v29_v10, %s243_s5  ;;  %v214_v23 = vld [vmem:[%s381_s0 + $0x6] ss:$16 sm:%s119_s25]   ;;  %s131_s6 = smov 3  ;;  %s134_s7 = smov 12  ;;  %v77_v25 = vsel %vm6_vm0, %v207_v22, %v206_v21 }
   0xd   :  { %54 = vrot.lane.b32.xlu1 %v53_v11, %s244_s14  ;;  %s247_s8 = smov 32   ;;  %v215_v24 = vld [vmem:[%s381_s0 + $0x6] ss:$16 sm:%s122_s27]   ;;  %s107_s15 = smov 3 }
   0xe   :  { %v216_v26 = vld [vmem:[%s381_s0 + $0x5] ss:$16 sm:%s131_s6]   ;;  %s110_s16 = smov 12  ;;  %v125_v28 = vsel %vm6_vm0, %v215_v24, %v214_v23  ;;  %s248_s17 = smov 40   ;;  %v212_v30 = vld [vmem:[%s381_s0 + $0x7] ss:$16 sm:%s107_s15]  }
   0xf   :  { %v217_v27 = vld [vmem:[%s381_s0 + $0x5] ss:$16 sm:%s134_s7]   ;;  %s155_s18 = smov 3  ;;  %s158_s19 = smov 12  ;;  %v213_v31 = vld [vmem:[%s381_s0 + $0x7] ss:$16 sm:%s110_s16]  }
  0x10   :  { %v137_v29 = vsel %vm6_vm0, %v217_v27, %v216_v26  ;;  %s249_s24 = smov 24   ;;  %v220_v32 = vld [vmem:[%s381_s0 + $0x3] ss:$16 sm:%s155_s18]   ;;  %s167_s27 = smov 3  ;;  %v113_v34 = vsel %vm6_vm0, %v213_v31, %v212_v30 }
  0x11   :  { %s170_s28 = smov 12  ;;  %s250_s29 = smov 20   ;;  %v221_v33 = vld [vmem:[%s381_s0 + $0x3] ss:$16 sm:%s158_s19]   ;;  %v222_v35 = vld [vmem:[%s381_s0 + $0x2] ss:$16 sm:%s167_s27]  }
  0x12   :  { %v223_v36 = vld [vmem:[%s381_s0 + $0x2] ss:$16 sm:%s170_s28]   ;;  %s143_s7 = smov 3  ;;  %v161_v37 = vsel %vm6_vm0, %v221_v33, %v220_v32  ;;  %s251_s9 = smov 28  }
  0x13   :  { %78 = vrot.lane.b32.xlu2 %v77_v25, %s248_s17  ;;  %v173_v38 = vsel %vm6_vm0, %v223_v36, %v222_v35  ;;  %v218_v39 = vld [vmem:[%s381_s0 + $0x4] ss:$16 sm:%s143_s7]   ;;  %s252_s14 = smov 12   ;;  %s253_s15 = smov 8  }
  0x14   :  { %90 = vrot.lane.b32.xlu0 %v89_v19, %s246_s3  ;;  %s179_s16 = smov 3  ;;  %s182_s17 = smov 12 }
  0x15   :  { %102 = vrot.lane.b32.xlu1 %v101_v20, %s247_s8  ;;  %s146_s8 = smov 12  ;;  %s254_s18 = smov 16   ;;  %v224_v42 = vld [vmem:[%s381_s0 + $0x1] ss:$16 sm:%s179_s16]  }
  0x16   :  { %v219_v40 = vld [vmem:[%s381_s0 + $0x4] ss:$16 sm:%s146_s8]   ;;  %v225_v43 = vld [vmem:[%s381_s0 + $0x1] ss:$16 sm:%s182_s17]   ;;  %s255_s23 = smov 4   ;;  %s4_s25 = smov 12 }
  0x17   :  { %v149_v41 = vsel %vm6_vm0, %v219_v40, %v218_v39  ;;  %v185_v44 = vsel %vm6_vm0, %v225_v43, %v224_v42  ;;  %v5_v46 = vld [vmem:[%s381_s0] ss:$16 sm:%s4_s25]  }
  0x1b   :  { %114 = vrot.lane.b32.xlu2 %v113_v34, %s251_s9 }
  0x1c   :  { %126 = vrot.lane.b32.xlu0 %v125_v28, %s249_s24  ;;  %s2_s24 = smov 3 }
  0x1d   :  { %138 = vrot.lane.b32.xlu1 %v137_v29, %s250_s29  ;;  %v3_v45 = vld [vmem:[%s381_s0] ss:$16 sm:%s2_s24]  }
  0x1e   :  { %v7_v47 = vsel %vm6_vm0, %v5_v46, %v3_v45  ;;  %vm188_vm0 = vcmask 64544  }
  0x1f   :  { %9 = vst.msk [vmem:[#allocation0] sm:$0xf] %vm8_vm1, %v7_v47  }
  0x23   :  { %150 = vrot.lane.b32.xlu2 %v149_v41, %s254_s18 }
  0x24   :  { %162 = vrot.lane.b32.xlu0 %v161_v37, %s252_s14 }
  0x25   :  { %174 = vrot.lane.b32.xlu1 %v173_v38, %s253_s15 }
  0x2b   :  { %186 = vrot.lane.b32.xlu2 %v185_v44, %s255_s23 }
  0x65   :  { %v67_v48 = vpop.permute.xlu2 %66  }
  0x6d   :  { %v79_v49 = vpop.permute.xlu2 %78  }
  0x75   :  { %v115_v52 = vpop.permute.xlu2 %114  }
  0x76   :  { %v19_v50 = vpop.permute.xlu0 %18  }
  0x77   :  { %21 = vst.msk [vmem:[#allocation0] sm:$0xf] %vm20_vm2, %v19_v50   ;;  %v43_v51 = vpop.permute.xlu1 %42  }
  0x7d   :  { %v151_v55 = vpop.permute.xlu2 %150  }
  0x7e   :  { %v31_v53 = vpop.permute.xlu0 %30  }
  0x7f   :  { %33 = vst.msk [vmem:[#allocation0] sm:$0xf] %vm32_vm3, %v31_v53   ;;  %v55_v54 = vpop.permute.xlu1 %54  }
  0x80   :  { %45 = vst.msk [vmem:[#allocation0] sm:$0xf] %vm44_vm4, %v43_v51  }
  0x81   :  { %57 = vst.msk [vmem:[#allocation0] sm:$0xf] %vm56_vm5, %v55_v54  }
  0x82   :  { %69 = vst.msk [vmem:[#allocation0] sm:$0xf] %vm68_vm6, %v67_v48  }
  0x83   :  { %81 = vst.msk [vmem:[#allocation0] sm:$0xf] %vm80_vm7, %v79_v49  }
  0x85   :  { %v187_v58 = vpop.permute.xlu2 %186  }
  0x86   :  { %v91_v56 = vpop.permute.xlu0 %90  }
  0x87   :  { %93 = vst.msk [vmem:[#allocation0] sm:$0xf] %vm92_vm8, %v91_v56   ;;  %v103_v57 = vpop.permute.xlu1 %102  }
  0x88   :  { %105 = vst.msk [vmem:[#allocation0] sm:$0xf] %vm104_vm9, %v103_v57  }
  0x89   :  { %117 = vst.msk [vmem:[#allocation0] sm:$0xf] %vm116_vm10, %v115_v52  }
  0x8e   :  { %v127_v59 = vpop.permute.xlu0 %126  }
  0x8f   :  { %129 = vst.msk [vmem:[#allocation0] sm:$0xf] %vm128_vm11, %v127_v59   ;;  %v139_v60 = vpop.permute.xlu1 %138  }
  0x90   :  { %141 = vst.msk [vmem:[#allocation0] sm:$0xf] %vm140_vm12, %v139_v60  }
  0x91   :  { %153 = vst.msk [vmem:[#allocation0] sm:$0xf] %vm152_vm13, %v151_v55  }
  0x96   :  { %v163_v61 = vpop.permute.xlu0 %162  }
  0x97   :  { %165 = vst.msk [vmem:[#allocation0] sm:$0xf] %vm164_vm14, %v163_v61   ;;  %v175_v62 = vpop.permute.xlu1 %174  }
  0x98   :  { %177 = vst.msk [vmem:[#allocation0] sm:$0xf] %vm176_vm15, %v175_v62  }
  0x99   :  { %189 = vst.msk [vmem:[#allocation0] sm:$0xf] %vm188_vm0, %v187_v58  }
  0xa0   :  { %v192_v63 = vld [vmem:[#allocation0] sm:$0xf] }
  0xa1   :  { %195 = vst [vmem:[%s382_s1] sm:$0xf] %v192_v63 }

// kernel: tile.19
= control target key start
LH: loop header
LB: loop body
LE: loop exit
PB: predicated region body
PF: predicated region fallthrough
CT: control target
= control target key end

     0   :  { %vm6_vm0 = vcmask 1043458   ;;  %vm10_vm1 = vcmask 1045508   ;;  %vm14_vm2 = vcmask 1047558   ;;  %s19_s6 = smov 3  ;;  %s22_s7 = smov 12  ;;  %vm16_vm3 = vcmask 64512   ;;  %s736_s0 = inlined_call_operand.vmem [shape: f32[16,8,8], index: 0, kind: input, shape index: {}]   ;;  %s737_s1 = inlined_call_operand.vmem [shape: f32[128,8], index: 1, kind: output, shape index: {}]  }
   0x1   :  { %v348_v0 = vld [vmem:[%s736_s0 + $0xf] ss:$16 sm:%s19_s6]   ;;  %s27_s12 = smov 48  ;;  %s32_s13 = smov 192  ;;  %vm38_vm4 = vcmask 1048512   ;;  %vm60_vm5 = vcmask 982912  }
   0x2   :  { %v349_v1 = vld [vmem:[%s736_s0 + $0xf] ss:$16 sm:%s22_s7]   ;;  %s63_s18 = smov 3  ;;  %s66_s21 = smov 12  ;;  %vm82_vm6 = vcmask 917312   ;;  %vm104_vm7 = vcmask 851712  }
   0x3   :  { %v25_v2 = vsel %vm6_vm0, %v349_v1, %v348_v0  ;;  %v350_v3 = vld [vmem:[%s736_s0 + $0xf] ss:$16 sm:%s27_s12]   ;;  %v356_v6 = vld [vmem:[%s736_s0 + $0xd] ss:$16 sm:%s63_s18]   ;;  %s71_s22 = smov 48  ;;  %s76_s27 = smov 192 }
   0x4   :  { %v351_v4 = vld [vmem:[%s736_s0 + $0xf] ss:$16 sm:%s32_s13]   ;;  %v30_v5 = vsel %vm10_vm1, %v350_v3, %v25_v2  ;;  %v357_v8 = vld [vmem:[%s736_s0 + $0xd] ss:$16 sm:%s66_s21]   ;;  %s423_s28 = smov 120   ;;  %s41_s2 = smov 3 }
   0x5   :  { %v35_v7 = vsel %vm14_vm2, %v351_v4, %v30_v5  ;;  %v358_v9 = vld [vmem:[%s736_s0 + $0xd] ss:$16 sm:%s71_s22]   ;;  %v69_v10 = vsel %vm6_vm0, %v357_v8, %v356_v6  ;;  %s44_s3 = smov 12  ;;  %v352_v13 = vld [vmem:[%s736_s0 + $0xe] ss:$16 sm:%s41_s2]   ;;  %s49_s8 = smov 48 }
   0x6   :  { %36 = vrot.lane.b32.xlu0 %v35_v7, %s423_s28  ;;  %v359_v11 = vld [vmem:[%s736_s0 + $0xd] ss:$16 sm:%s76_s27]   ;;  %v74_v12 = vsel %vm10_vm1, %v358_v9, %v69_v10  ;;  %s54_s9 = smov 192  ;;  %s85_s14 = smov 3  ;;  %vm126_vm8 = vcmask 786112   ;;  %vm148_vm9 = vcmask 720512  }
   0x7   :  { %v353_v14 = vld [vmem:[%s736_s0 + $0xe] ss:$16 sm:%s44_s3]   ;;  %v79_v15 = vsel %vm14_vm2, %v359_v11, %v74_v12  ;;  %s424_s15 = smov 104   ;;  %v360_v20 = vld [vmem:[%s736_s0 + $0xc] ss:$16 sm:%s85_s14]   ;;  %s88_s18 = smov 12 }
   0x8   :  { %v47_v16 = vsel %vm6_vm0, %v353_v14, %v352_v13  ;;  %v354_v17 = vld [vmem:[%s736_s0 + $0xe] ss:$16 sm:%s49_s8]   ;;  %80 = vrot.lane.b32.xlu1 %v79_v15, %s424_s15  ;;  %s93_s19 = smov 48  ;;  %s98_s24 = smov 192  ;;  %vm170_vm10 = vcmask 654912   ;;  %vm192_vm11 = vcmask 589312  }
   0x9   :  { %v355_v18 = vld [vmem:[%s736_s0 + $0xe] ss:$16 sm:%s54_s9]   ;;  %v52_v19 = vsel %vm10_vm1, %v354_v17, %v47_v16  ;;  %v361_v21 = vld [vmem:[%s736_s0 + $0xc] ss:$16 sm:%s88_s18]   ;;  %s151_s27 = smov 3  ;;  %s154_s28 = smov 12 }
   0xa   :  { %v362_v22 = vld [vmem:[%s736_s0 + $0xc] ss:$16 sm:%s93_s19]   ;;  %v57_v23 = vsel %vm14_vm2, %v355_v18, %v52_v19  ;;  %v91_v24 = vsel %vm6_vm0, %v361_v21, %v360_v20  ;;  %v372_v27 = vld [vmem:[%s736_s0 + $0x9] ss:$16 sm:%s151_s27]   ;;  %s159_s4 = smov 48  ;;  %s164_s7 = smov 192 }
   0xb   :  { %v363_v25 = vld [vmem:[%s736_s0 + $0xc] ss:$16 sm:%s98_s24]   ;;  %v96_v26 = vsel %vm10_vm1, %v362_v22, %v91_v24  ;;  %v373_v28 = vld [vmem:[%s736_s0 + $0x9] ss:$16 sm:%s154_s28]   ;;  %s173_s8 = smov 3  ;;  %s425_s9 = smov 112  }
   0xc   :  { %v157_v29 = vsel %vm6_vm0, %v373_v28, %v372_v27  ;;  %v374_v30 = vld [vmem:[%s736_s0 + $0x9] ss:$16 sm:%s159_s4]   ;;  %v101_v31 = vsel %vm14_vm2, %v363_v25, %v96_v26  ;;  %v376_v32 = vld [vmem:[%s736_s0 + $0x8] ss:$16 sm:%s173_s8]   ;;  %s176_s12 = smov 12  ;;  %s181_s13 = smov 48 }
   0xd   :  { %v377_v33 = vld [vmem:[%s736_s0 + $0x8] ss:$16 sm:%s176_s12]   ;;  %s186_s16 = smov 192  ;;  %v162_v34 = vsel %vm10_vm1, %v374_v30, %v157_v29  ;;  %v375_v35 = vld [vmem:[%s736_s0 + $0x9] ss:$16 sm:%s164_s7]   ;;  %s217_s21 = smov 3 }
   0xe   :  { %58 = vrot.lane.b32.xlu0 %v57_v23, %s425_s9  ;;  %v179_v36 = vsel %vm6_vm0, %v377_v33, %v376_v32  ;;  %v378_v37 = vld [vmem:[%s736_s0 + $0x8] ss:$16 sm:%s181_s13]   ;;  %s220_s22 = smov 12  ;;  %s426_s23 = smov 96   ;;  %v167_v40 = vsel %vm14_vm2, %v375_v35, %v162_v34  ;;  %vm214_vm12 = vcmask 523712   ;;  %vm236_vm13 = vcmask 458112  }
   0xf   :  { %s225_s24 = smov 48  ;;  %v384_v38 = vld [vmem:[%s736_s0 + $0x6] ss:$16 sm:%s217_s21]   ;;  %s239_s29 = smov 3  ;;  %v184_v41 = vsel %vm10_vm1, %v378_v37, %v179_v36  ;;  %v379_v42 = vld [vmem:[%s736_s0 + $0x8] ss:$16 sm:%s186_s16]  }
  0x10   :  { %102 = vrot.lane.b32.xlu1 %v101_v31, %s426_s23  ;;  %v385_v39 = vld [vmem:[%s736_s0 + $0x6] ss:$16 sm:%s220_s22]   ;;  %s230_s3 = smov 192  ;;  %s242_s4 = smov 12  ;;  %v189_v47 = vsel %vm14_vm2, %v379_v42, %v184_v41  ;;  %vm258_vm14 = vcmask 392512   ;;  %vm280_vm15 = vcmask 326912  }
  0x11   :  { %v386_v43 = vld [vmem:[%s736_s0 + $0x6] ss:$16 sm:%s225_s24]   ;;  %s247_s7 = smov 48  ;;  %v223_v44 = vsel %vm6_vm0, %v385_v39, %v384_v38  ;;  %v388_v45 = vld [vmem:[%s736_s0 + $0x5] ss:$16 sm:%s239_s29]   ;;  %s107_s12 = smov 3 }
  0x12   :  { %v389_v46 = vld [vmem:[%s736_s0 + $0x5] ss:$16 sm:%s242_s4]   ;;  %s110_s13 = smov 12  ;;  %s427_s14 = smov 72   ;;  %v387_v48 = vld [vmem:[%s736_s0 + $0x6] ss:$16 sm:%s230_s3]   ;;  %v228_v52 = vsel %vm10_vm1, %v386_v43, %v223_v44 }
  0x13   :  { %v364_v49 = vld [vmem:[%s736_s0 + $0xb] ss:$16 sm:%s107_s12]   ;;  %s115_s19 = smov 48  ;;  %s120_s20 = smov 192  ;;  %v245_v53 = vsel %vm6_vm0, %v389_v46, %v388_v45  ;;  %v390_v54 = vld [vmem:[%s736_s0 + $0x5] ss:$16 sm:%s247_s7]   ;;  %v233_v61 = vsel %vm14_vm2, %v387_v48, %v228_v52 }
  0x14   :  { %s252_s21 = smov 192  ;;  %v365_v50 = vld [vmem:[%s736_s0 + $0xb] ss:$16 sm:%s110_s13]   ;;  %s283_s26 = smov 3  ;;  %v250_v62 = vsel %vm10_vm1, %v390_v54, %v245_v53 }
  0x15   :  { %v366_v51 = vld [vmem:[%s736_s0 + $0xb] ss:$16 sm:%s115_s19]   ;;  %v113_v55 = vsel %vm6_vm0, %v365_v50, %v364_v49  ;;  %s286_s2 = smov 12  ;;  %s428_s3 = smov 64   ;;  %v396_v59 = vld [vmem:[%s736_s0 + $0x3] ss:$16 sm:%s283_s26]  }
  0x16   :  { %168 = vrot.lane.b32.xlu0 %v167_v40, %s427_s14  ;;  %v367_v56 = vld [vmem:[%s736_s0 + $0xb] ss:$16 sm:%s120_s20]   ;;  %v118_v57 = vsel %vm10_vm1, %v366_v51, %v113_v55  ;;  %s291_s4 = smov 48  ;;  %s305_s9 = smov 3 }
  0x17   :  { %v123_v58 = vsel %vm14_vm2, %v367_v56, %v118_v57  ;;  %v397_v60 = vld [vmem:[%s736_s0 + $0x3] ss:$16 sm:%s286_s2]   ;;  %s308_s10 = smov 12  ;;  %v391_v63 = vld [vmem:[%s736_s0 + $0x5] ss:$16 sm:%s252_s21]   ;;  %s429_s13 = smov 88  }
  0x18   :  { %190 = vrot.lane.b32.xlu1 %v189_v47, %s428_s3  ;;  %124 = vrot.lane.b32.xlu2 %v123_v58, %s429_s13  ;;  %s296_s14 = smov 192  ;;  %s313_s15 = smov 48  ;;  %v398_v0 = vld [vmem:[%s736_s0 + $0x3] ss:$16 sm:%s291_s4]   ;;  %v289_v2 = vsel %vm6_vm0, %v397_v60, %v396_v59  ;;  %v255_v5 = vsel %vm14_vm2, %v391_v63, %v250_v62 }
  0x19   :  { %v400_v1 = vld [vmem:[%s736_s0 + $0x2] ss:$16 sm:%s305_s9]   ;;  %s129_s20 = smov 3  ;;  %s132_s25 = smov 12  ;;  %v399_v6 = vld [vmem:[%s736_s0 + $0x3] ss:$16 sm:%s296_s14]   ;;  %v294_v12 = vsel %vm10_vm1, %v398_v0, %v289_v2 }
  0x1a   :  { %v401_v3 = vld [vmem:[%s736_s0 + $0x2] ss:$16 sm:%s308_s10]   ;;  %v368_v4 = vld [vmem:[%s736_s0 + $0xa] ss:$16 sm:%s129_s20]   ;;  %s137_s26 = smov 48  ;;  %s430_s27 = smov 48   ;;  %v299_v20 = vsel %vm14_vm2, %v399_v6, %v294_v12 }
  0x1b   :  { %v402_v7 = vld [vmem:[%s736_s0 + $0x2] ss:$16 sm:%s313_s15]   ;;  %s318_s3 = smov 192  ;;  %v369_v8 = vld [vmem:[%s736_s0 + $0xa] ss:$16 sm:%s132_s25]   ;;  %s142_s6 = smov 192  ;;  %v311_v13 = vsel %vm6_vm0, %v401_v3, %v400_v1 }
  0x1c   :  { %v135_v9 = vsel %vm6_vm0, %v369_v8, %v368_v4  ;;  %v370_v10 = vld [vmem:[%s736_s0 + $0xa] ss:$16 sm:%s137_s26]   ;;  %s195_s11 = smov 3  ;;  %s198_s12 = smov 12  ;;  %v316_v21 = vsel %vm10_vm1, %v402_v7, %v311_v13  ;;  %v403_v22 = vld [vmem:[%s736_s0 + $0x2] ss:$16 sm:%s318_s3]  }
  0x1d   :  { %v371_v11 = vld [vmem:[%s736_s0 + $0xa] ss:$16 sm:%s142_s6]   ;;  %v140_v14 = vsel %vm10_vm1, %v370_v10, %v135_v9  ;;  %v380_v15 = vld [vmem:[%s736_s0 + $0x7] ss:$16 sm:%s195_s11]   ;;  %s203_s17 = smov 48  ;;  %s431_s18 = smov 40   ;;  %v321_v25 = vsel %vm14_vm2, %v403_v22, %v316_v21 }
  0x1e   :  { %234 = vrot.lane.b32.xlu0 %v233_v61, %s430_s27  ;;  %v381_v16 = vld [vmem:[%s736_s0 + $0x7] ss:$16 sm:%s198_s12]   ;;  %v145_v17 = vsel %vm14_vm2, %v371_v11, %v140_v14  ;;  %s208_s21 = smov 192  ;;  %s432_s24 = smov 80  }
  0x1f   :  { %v201_v18 = vsel %vm6_vm0, %v381_v16, %v380_v15  ;;  %v382_v19 = vld [vmem:[%s736_s0 + $0x7] ss:$16 sm:%s203_s17]   ;;  %s261_s25 = smov 3  ;;  %s264_s26 = smov 12 }
  0x20   :  { %256 = vrot.lane.b32.xlu1 %v255_v5, %s431_s18  ;;  %146 = vrot.lane.b32.xlu2 %v145_v17, %s432_s24  ;;  %v206_v23 = vsel %vm10_vm1, %v382_v19, %v201_v18  ;;  %v383_v24 = vld [vmem:[%s736_s0 + $0x7] ss:$16 sm:%s208_s21]   ;;  %s433_s29 = smov 24   ;;  %s269_s5 = smov 48 }
  0x21   :  { %v392_v26 = vld [vmem:[%s736_s0 + $0x4] ss:$16 sm:%s261_s25]   ;;  %v211_v28 = vsel %vm14_vm2, %v383_v24, %v206_v23  ;;  %s434_s6 = smov 16   ;;  %s274_s9 = smov 192 }
  0x22   :  { %v393_v27 = vld [vmem:[%s736_s0 + $0x4] ss:$16 sm:%s264_s26]   ;;  %s435_s10 = smov 56   ;;  %s327_s11 = smov 3 }
  0x23   :  { %v267_v29 = vsel %vm6_vm0, %v393_v27, %v392_v26  ;;  %v394_v30 = vld [vmem:[%s736_s0 + $0x4] ss:$16 sm:%s269_s5]   ;;  %s330_s12 = smov 12  ;;  %v404_v33 = vld [vmem:[%s736_s0 + $0x1] ss:$16 sm:%s327_s11]   ;;  %s335_s19 = smov 48 }
  0x24   :  { %v272_v31 = vsel %vm10_vm1, %v394_v30, %v267_v29  ;;  %v395_v32 = vld [vmem:[%s736_s0 + $0x4] ss:$16 sm:%s274_s9]   ;;  %v405_v34 = vld [vmem:[%s736_s0 + $0x1] ss:$16 sm:%s330_s12]   ;;  %s340_s22 = smov 192  ;;  %s436_s23 = smov 32  }
  0x25   :  { %v277_v35 = vsel %vm14_vm2, %v395_v32, %v272_v31  ;;  %v333_v36 = vsel %vm6_vm0, %v405_v34, %v404_v33  ;;  %v406_v37 = vld [vmem:[%s736_s0 + $0x1] ss:$16 sm:%s335_s19]   ;;  %s437_s26 = smov 8   ;;  %s2_s27 = smov 3 }
  0x26   :  { %300 = vrot.lane.b32.xlu0 %v299_v20, %s433_s29  ;;  %v338_v38 = vsel %vm10_vm1, %v406_v37, %v333_v36  ;;  %v407_v39 = vld [vmem:[%s736_s0 + $0x1] ss:$16 sm:%s340_s22]   ;;  %s4_s28 = smov 12  ;;  %s8_s29 = smov 48 }
  0x27   :  { %v343_v40 = vsel %vm14_vm2, %v407_v39, %v338_v38  ;;  %s12_s30 = smov 192  ;;  %v3_v41 = vld [vmem:[%s736_s0] ss:$16 sm:%s2_s27]  }
  0x28   :  { %322 = vrot.lane.b32.xlu1 %v321_v25, %s434_s6  ;;  %212 = vrot.lane.b32.xlu2 %v211_v28, %s435_s10  ;;  %v5_v42 = vld [vmem:[%s736_s0] ss:$16 sm:%s4_s28]  }
  0x29   :  { %v7_v43 = vsel %vm6_vm0, %v5_v42, %v3_v41  ;;  %v9_v44 = vld [vmem:[%s736_s0] ss:$16 sm:%s8_s29]   ;;  %vm302_vm0 = vcmask 261312  }
  0x2a   :  { %v11_v45 = vsel %vm10_vm1, %v9_v44, %v7_v43  ;;  %v13_v46 = vld [vmem:[%s736_s0] ss:$16 sm:%s12_s30]   ;;  %vm324_vm1 = vcmask 195712  }
  0x2b   :  { %v15_v47 = vsel %vm14_vm2, %v13_v46, %v11_v45  ;;  %vm346_vm2 = vcmask 130112  }
  0x2c   :  { %17 = vst.msk [vmem:[%s737_s1] sm:$0xff] %vm16_vm3, %v15_v47  }
  0x30   :  { %278 = vrot.lane.b32.xlu2 %v277_v35, %s436_s23 }
  0x38   :  { %344 = vrot.lane.b32.xlu2 %v343_v40, %s437_s26 }
  0x72   :  { %v125_v48 = vpop.permute.xlu2 %124  }
  0x78   :  { %v37_v49 = vpop.permute.xlu0 %36  }
  0x79   :  { %39 = vst.msk [vmem:[%s737_s1] sm:$0xff] %vm38_vm4, %v37_v49  }
  0x7a   :  { %v81_v50 = vpop.permute.xlu1 %80   ;;  %v147_v51 = vpop.permute.xlu2 %146  }
  0x80   :  { %v59_v52 = vpop.permute.xlu0 %58  }
  0x81   :  { %61 = vst.msk [vmem:[%s737_s1] sm:$0xff] %vm60_vm5, %v59_v52  }
  0x82   :  { %83 = vst.msk [vmem:[%s737_s1] sm:$0xff] %vm82_vm6, %v81_v50   ;;  %v103_v53 = vpop.permute.xlu1 %102   ;;  %v213_v54 = vpop.permute.xlu2 %212  }
  0x83   :  { %105 = vst.msk [vmem:[%s737_s1] sm:$0xff] %vm104_vm7, %v103_v53  }
  0x84   :  { %127 = vst.msk [vmem:[%s737_s1] sm:$0xff] %vm126_vm8, %v125_v48  }
  0x85   :  { %149 = vst.msk [vmem:[%s737_s1] sm:$0xff] %vm148_vm9, %v147_v51  }
  0x88   :  { %v169_v55 = vpop.permute.xlu0 %168  }
  0x89   :  { %171 = vst.msk [vmem:[%s737_s1] sm:$0xff] %vm170_vm10, %v169_v55  }
  0x8a   :  { %v191_v56 = vpop.permute.xlu1 %190   ;;  %v279_v57 = vpop.permute.xlu2 %278  }
  0x8b   :  { %193 = vst.msk [vmem:[%s737_s1] sm:$0xff] %vm192_vm11, %v191_v56  }
  0x8c   :  { %215 = vst.msk [vmem:[%s737_s1] sm:$0xff] %vm214_vm12, %v213_v54  }
  0x90   :  { %v235_v58 = vpop.permute.xlu0 %234  }
  0x91   :  { %237 = vst.msk [vmem:[%s737_s1] sm:$0xff] %vm236_vm13, %v235_v58  }
  0x92   :  { %v257_v59 = vpop.permute.xlu1 %256   ;;  %v345_v60 = vpop.permute.xlu2 %344  }
  0x93   :  { %259 = vst.msk [vmem:[%s737_s1] sm:$0xff] %vm258_vm14, %v257_v59  }
  0x94   :  { %281 = vst.msk [vmem:[%s737_s1] sm:$0xff] %vm280_vm15, %v279_v57  }
  0x98   :  { %v301_v61 = vpop.permute.xlu0 %300  }
  0x99   :  { %303 = vst.msk [vmem:[%s737_s1] sm:$0xff] %vm302_vm0, %v301_v61  }
  0x9a   :  { %v323_v62 = vpop.permute.xlu1 %322  }
  0x9b   :  { %325 = vst.msk [vmem:[%s737_s1] sm:$0xff] %vm324_vm1, %v323_v62  }
  0x9c   :  { %347 = vst.msk [vmem:[%s737_s1] sm:$0xff] %vm346_vm2, %v345_v60  }

// kernel: rcblock_forward.1
= control target key start
LH: loop header
LB: loop body
LE: loop exit
PB: predicated region body
PF: predicated region fallthrough
CT: control target
= control target key end

     0   :  { %v93_v11 = vlaneseq  ;;  %vm47_vm0 = vcmask 1046528   ;;  %vm70_vm1 = vcmask 1045504   ;;  %vm149_vm4 = vcmask 654336   ;;  %s1227_s1 = inlined_call_operand.vmem [shape: f32[3,80,64], index: 1, kind: input, shape index: {}]   ;;  %s1228_s0 = inlined_call_operand.vmem [shape: f32[2,20,80], index: 0, kind: input, shape index: {}]   ;;  %s1229_s3 = inlined_call_operand.vmem [shape: f32[64,4], index: 3, kind: input, shape index: {}]   ;;  %s1230_s4 = inlined_call_operand.vmem [shape: f32[4,64], index: 4, kind: input, shape index: {}]   ;;  %s1231_s2 = inlined_call_operand.vmem [shape: f32[64,128], index: 2, kind: input, shape index: {}]   ;;  %s1232_s7 = inlined_call_operand.vmem [shape: f32[1,4], index: 7, kind: input, shape index: {}]   ;;  %s1233_s5 = inlined_call_operand.vmem [shape: f32[128,8], index: 5, kind: input, shape index: {}]   ;;  %s1234_s6 = inlined_call_operand.vmem [shape: f32[8,128], index: 6, kind: input, shape index: {}]   ;;  %s1235_s9 = inlined_call_operand.vmem [shape: f32[1,8], index: 9, kind: input, shape index: {}]   ;;  %s1236_s8 = inlined_call_operand.vmem [shape: f32[1,8], index: 8, kind: input, shape index: {}]   ;;  %s1237_s10 = inlined_call_operand.vmem [shape: f32[32,128], index: 10, kind: output, shape index: {}]  }
   0x1   :  { %v792_v0 = vld [vmem:[%s1227_s1 + $0xe8] sm:$0xff]  ;;  %v791_v1 = vld [vmem:[%s1227_s1 + $0xe0] sm:$0xff]  ;;  %v774_v2 = vld [vmem:[%s1227_s1 + $0x98] sm:$0xff]  ;;  %vm337_vm5 = vcmask 1043456   ;;  %vm286_vm6 = vcmask 523264   ;;  %vm333_vm7 = vcmask 31744  }
   0x2   :  { %259 = vmatpush.msra.mxu2 %v792_v0  ;;  %164 = vmatpush.msra.mxu0 %v774_v2  ;;  %v121_v3 = vld [vmem:[%s1227_s1 + $0x48] sm:$0xff]  ;;  %v773_v4 = vld [vmem:[%s1227_s1 + $0x90] sm:$0xff]  ;;  %v790_v5 = vld [vmem:[%s1227_s1 + $0xd8] sm:$0xff]  ;;  %v943_v19 = vshrl.u32 %v93_v11, 7  ;;  %vm544_vm11 = vcmask 64512  }
   0x3   :  { %201 = vmatpush.msra.mxu1 %v121_v3  ;;  %v120_v6 = vld [vmem:[%s1227_s1 + $0x40] sm:$0xff]  ;;  %v772_v7 = vld [vmem:[%s1227_s1 + $0x88] sm:$0xff]  ;;  %v119_v8 = vld [vmem:[%s1227_s1 + $0x38] sm:$0xff] }
   0x4   :  { %260 = vmatpush.msra.mxu2 %v791_v1  ;;  %165 = vmatpush.msra.mxu0 %v773_v4  ;;  %v789_v9 = vld [vmem:[%s1227_s1 + $0xd0] sm:$0xff]  ;;  %v771_v10 = vld [vmem:[%s1227_s1 + $0x80] sm:$0xff]  ;;  %v788_v13 = vld [vmem:[%s1227_s1 + $0xc8] sm:$0xff]  ;;  %v964_v32 = vadd.s32 16, %v943_v19  ;;  %vm97_vm2 = vcmp.ge.s32.totalorder %v943_v19, 1 }
   0x5   :  { %202 = vmatpush.msra.mxu1 %v120_v6  ;;  %v118_v12 = vld [vmem:[%s1227_s1 + $0x30] sm:$0xff]  ;;  %v770_v14 = vld [vmem:[%s1227_s1 + $0x78] sm:$0xff]  ;;  %v117_v15 = vld [vmem:[%s1227_s1 + $0x28] sm:$0xff] }
   0x6   :  { %261 = vmatpush.msra.mxu2 %v790_v5  ;;  %166 = vmatpush.msra.mxu0 %v772_v7  ;;  %v787_v16 = vld [vmem:[%s1227_s1 + $0xc0] sm:$0xff]  ;;  %v769_v17 = vld [vmem:[%s1227_s1 + $0x70] sm:$0xff]  ;;  %v36_v21 = vld [vmem:[%s1228_s0 + $0x8] sm:$0xff]  ;;  %vm102_vm3 = vcmp.le.s32.totalorder %v964_v32, 16 }
   0x7   :  { %203 = vmatpush.msra.mxu1 %v119_v8  ;;  %v35_v18 = vld [vmem:[%s1228_s0] sm:$0xff]  ;;  %v37_v22 = vld [vmem:[%s1228_s0 + $0x10] sm:$0xf]  ;;  %v786_v25 = vld [vmem:[%s1227_s1 + $0xb8] sm:$0xff]  ;;  %v49_v27 = vrot.slane %v36_v21, 1  ;;  %v72_v29 = vrot.slane %v36_v21, 2 }
   0x8   :  { %262 = vmatpush.msra.mxu2 %v789_v9  ;;  %167 = vmatpush.msra.mxu0 %v771_v10  ;;  %v116_v20 = vld [vmem:[%s1227_s1 + $0x20] sm:$0xff]  ;;  %v48_v23 = vrot.slane %v35_v18, 1  ;;  %v71_v24 = vrot.slane %v35_v18, 2  ;;  %v768_v26 = vld [vmem:[%s1227_s1 + $0x68] sm:$0xff]  ;;  %v51_v28 = vrot.slane %v37_v22, 1  ;;  %v74_v30 = vrot.slane %v37_v22, 2 }
   0x9   :  { %204 = vmatpush.msra.mxu1 %v118_v12  ;;  %v115_v31 = vld [vmem:[%s1227_s1 + $0x18] sm:$0xff]  ;;  %v972_v34 = vld [vmem:[%s1228_s0 + $0x20] sm:$0xff]  ;;  %v785_v35 = vld [vmem:[%s1227_s1 + $0xb0] sm:$0xff] }
   0xa   :  { %263 = vmatpush.msra.mxu2 %v788_v13  ;;  %168 = vmatpush.msra.mxu0 %v770_v14  ;;  %v38_v33 = vld [vmem:[%s1228_s0 + $0x18] sm:$0xff]  ;;  %v767_v36 = vld [vmem:[%s1227_s1 + $0x60] sm:$0xff]  ;;  %v50_v37 = vsel %vm47_vm0, %v48_v23, %v49_v27  ;;  %v52_v38 = vsel %vm47_vm0, %v49_v27, %v51_v28  ;;  %v73_v39 = vsel %vm70_vm1, %v71_v24, %v72_v29  ;;  %v987_v41 = vld [vmem:[%s1228_s0 + $0x28] sm:$0xf]  ;;  %v54_v49 = vrot.slane %v972_v34, 1 }
   0xb   :  { %205 = vmatpush.msra.mxu1 %v117_v15  ;;  %v75_v40 = vsel %vm70_vm1, %v72_v29, %v74_v30  ;;  %v114_v42 = vld [vmem:[%s1227_s1 + $0x10] sm:$0xff]  ;;  %v64_v43 = vadd.f32 %v50_v37, %v35_v18  ;;  %v65_v44 = vadd.f32 %v52_v38, %v36_v21  ;;  %v66_v45 = vadd.f32 %v51_v28, %v37_v22  ;;  %v784_v47 = vld [vmem:[%s1227_s1 + $0xa8] sm:$0xff]  ;;  %v766_v48 = vld [vmem:[%s1227_s1 + $0x58] sm:$0xff] }
   0xc   :  { %264 = vmatpush.msra.mxu2 %v787_v16  ;;  %169 = vmatpush.msra.mxu0 %v769_v17  ;;  %v53_v46 = vrot.slane %v38_v33, 1  ;;  %v113_v52 = vld [vmem:[%s1227_s1 + $0x8] sm:$0xff]  ;;  %v56_v54 = vrot.slane %v987_v41, 1  ;;  %v783_v55 = vld [vmem:[%s1227_s1 + $0xa0] sm:$0xff]  ;;  %v765_v56 = vld [vmem:[%s1227_s1 + $0x50] sm:$0xff]  ;;  %v76_v58 = vrot.slane %v38_v33, 2 }
   0xd   :  { %206 = vmatpush.msra.mxu1 %v116_v20  ;;  %v87_v50 = vadd.f32 %v73_v39, %v64_v43  ;;  %v88_v51 = vadd.f32 %v75_v40, %v65_v44  ;;  %v89_v53 = vadd.f32 %v74_v30, %v66_v45  ;;  %v77_v59 = vrot.slane %v972_v34, 2  ;;  %v112_v62 = vld [vmem:[%s1227_s1] sm:$0xff]  ;;  %v307_v32 = vld [vmem:[%s1229_s3 + $0x38] sm:$0xff]  ;;  %v302_v40 = vld [vmem:[%s1229_s3 + $0x10] sm:$0xff] }
   0xe   :  { %265 = vmatpush.msra.mxu2 %v786_v25  ;;  %170 = vmatpush.msra.mxu0 %v768_v26  ;;  %v55_v57 = vsel %vm47_vm0, %v53_v46, %v54_v49  ;;  %v57_v3 = vsel %vm47_vm0, %v54_v49, %v56_v54  ;;  %v79_v5 = vrot.slane %v987_v41, 2  ;;  %v69_v18 = vadd.f32 %v56_v54, %v987_v41  ;;  %v304_v37 = vld [vmem:[%s1229_s3 + $0x20] sm:$0xff]  ;;  %v303_v39 = vld [vmem:[%s1229_s3 + $0x18] sm:$0xff] }
   0xf   :  { %207 = vmatpush.msra.mxu1 %v115_v31  ;;  %v106_v60 = vsel %vm97_vm2, %v87_v50, 0.0  ;;  %v225_v61 = vrot.slane %v88_v51, 2  ;;  %v129_v63 = vrot.slane %v88_v51, 1  ;;  %v108_v2 = vsel %vm102_vm3, %v89_v53, 0.0  ;;  %319 = vmatpush.msra.mxu3 %v307_v32  ;;  %v300_v43 = vld [vmem:[%s1229_s3] sm:$0xff] }
  0x10   :  { %266 = vmatpush.msra.mxu2 %v785_v35  ;;  %171 = vmatpush.msra.mxu0 %v767_v36  ;;  %v224_v0 = vrot.slane %v106_v60, 2  ;;  %v128_v1 = vrot.slane %v106_v60, 1  ;;  %v67_v4 = vadd.f32 %v55_v57, %v38_v33  ;;  %v78_v8 = vsel %vm70_vm1, %v76_v58, %v77_v59  ;;  %v305_v35 = vld [vmem:[%s1229_s3 + $0x28] sm:$0xff]  ;;  %v332_v46 = vld [vmem:[%s1230_s4] sm:$0xf] }
  0x11   :  { %208 = vmatpush.msra.mxu1 %v114_v42  ;;  %v227_v9 = vrot.slane %v108_v2, 2  ;;  %v131_v10 = vrot.slane %v108_v2, 1  ;;  %v68_v11 = vadd.f32 %v57_v3, %v972_v34  ;;  %v80_v12 = vsel %vm70_vm1, %v77_v59, %v79_v5  ;;  %v306_v34 = vld [vmem:[%s1229_s3 + $0x30] sm:$0xff]  ;;  %v301_v42 = vld [vmem:[%s1229_s3 + $0x8] sm:$0xff] }
  0x12   :  { %267 = vmatpush.msra.mxu2 %v784_v47  ;;  %172 = vmatpush.msra.mxu0 %v766_v48  ;;  %v226_v6 = vsel %vm70_vm1, %v224_v0, %v225_v61  ;;  %v130_v7 = vsel %vm47_vm0, %v128_v1, %v129_v63  ;;  %v90_v13 = vadd.f32 %v78_v8, %v67_v4 }
  0x13   :  { %209 = vmatpush.msra.mxu1 %v113_v52  ;;  %v228_v14 = vsel %vm70_vm1, %v225_v61, %v227_v9  ;;  %v132_v15 = vsel %vm47_vm0, %v129_v63, %v131_v10  ;;  %v91_v16 = vadd.f32 %v80_v12, %v68_v11  ;;  %v92_v24 = vadd.f32 %v79_v5, %v69_v18 }
  0x14   :  { %268 = vmatpush.msra.mxu2 %v783_v55  ;;  %173 = vmatpush.msra.mxu0 %v765_v56  ;;  %v109_v17 = vsel %vm97_vm2, %v90_v13, 0.0 }
  0x15   :  { %210 = vmatpush.msra.mxu1 %v112_v62  ;;  %793 = vmatmul.msk.f32.vlgmr.msra.gmra.mxu2 %vm149_vm4, %v226_v6  ;;  %v229_v20 = vrot.slane %v109_v17, 2  ;;  %v230_v21 = vrot.slane %v91_v16, 2  ;;  %v133_v22 = vrot.slane %v109_v17, 1  ;;  %v134_v23 = vrot.slane %v91_v16, 1 }
  0x16   :  { %775 = vmatmul.msk.f32.vlgmr.msra.gmra.mxu0 %vm149_vm4, %v130_v7  ;;  %779 = vmatmul.msk.f32.vlgmr.msra.gmra.mxu1 %vm149_vm4, %v106_v60  ;;  %v111_v19 = vsel %vm102_vm3, %v92_v24, 0.0 }
  0x17   :  { %v231_v25 = vsel %vm70_vm1, %v229_v20, %v230_v21  ;;  %v135_v26 = vsel %vm47_vm0, %v133_v22, %v134_v23  ;;  %v232_v27 = vrot.slane %v111_v19, 2  ;;  %v136_v28 = vrot.slane %v111_v19, 1  ;;  %320 = vmatpush.msra.mxu3 %v306_v34 }
  0x19   :  { %v233_v29 = vsel %vm70_vm1, %v230_v21, %v232_v27  ;;  %v137_v30 = vsel %vm47_vm0, %v134_v23, %v136_v28  ;;  %321 = vmatpush.msra.mxu3 %v305_v35 }
  0x1b   :  { %322 = vmatpush.msra.mxu3 %v304_v37 }
  0x1d   :  { %794 = vmatmul.msk.f32.gmra.mxu2 %vm149_vm4, %v228_v14  ;;  %323 = vmatpush.msra.mxu3 %v303_v39 }
  0x1e   :  { %776 = vmatmul.msk.f32.gmra.mxu0 %vm149_vm4, %v132_v15  ;;  %780 = vmatmul.msk.f32.gmra.mxu1 %vm149_vm4, %v88_v51 }
  0x1f   :  { %324 = vmatpush.msra.mxu3 %v302_v40 }
  0x21   :  { %325 = vmatpush.msra.mxu3 %v301_v42 }
  0x23   :  { %326 = vmatpush.msra.mxu3 %v300_v43 }
  0x25   :  { %795 = vmatmul.msk.f32.gmra.mxu2 %vm149_vm4, %v231_v25  ;;  %798 = vmatpush.msk.msrb.mxu3 %vm337_vm5, %v332_v46 }
  0x26   :  { %777 = vmatmul.msk.f32.gmra.mxu0 %vm149_vm4, %v135_v26  ;;  %781 = vmatmul.msk.f32.gmra.mxu1 %vm149_vm4, %v109_v17 }
  0x2d   :  { %796 = vmatmul.msk.f32.gmra.mxu2 %vm149_vm4, %v233_v29 }
  0x2e   :  { %778 = vmatmul.msk.f32.gmra.mxu0 %vm149_vm4, %v137_v30  ;;  %782 = vmatmul.msk.f32.gmra.mxu1 %vm149_vm4, %v91_v16 }
  0x93   :  { %v175_v31 = vpop.f32.mrf.mxu0  ;;  %v212_v33 = vpop.f32.mrf.mxu1 }
  0x94   :  { %v213_v49 = vadd.f32 %v212_v33, %v175_v31 }
  0x98   :  { %v270_v36 = vpop.f32.mrf.mxu2 }
  0x99   :  { %v282_v54 = vadd.f32 %v270_v36, %v213_v49  ;;  %v453_v36 = vld [vmem:[%s1231_s2 + $0x28] sm:$0xff]  ;;  %v407_v49 = vld [vmem:[%s1232_s7] sm:$0x1] }
  0x9b   :  { %v178_v38 = vpop.f32.mrf.mxu0  ;;  %v215_v41 = vpop.f32.mrf.mxu1  ;;  %v287_v59 = vsel %vm286_vm6, %v282_v54, 0.0 }
  0x9c   :  { %v216_v48 = vadd.f32 %v215_v41, %v178_v38  ;;  %v451_v38 = vld [vmem:[%s1231_s2 + $0x18] sm:$0xff]  ;;  %v450_v41 = vld [vmem:[%s1231_s2 + $0x10] sm:$0xff] }
  0xa0   :  { %v273_v44 = vpop.f32.mrf.mxu2 }
  0xa1   :  { %v283_v52 = vadd.f32 %v273_v44, %v216_v48 }
  0xa3   :  { %v181_v45 = vpop.f32.mrf.mxu0  ;;  %v218_v47 = vpop.f32.mrf.mxu1  ;;  %v288_v57 = vsel %vm286_vm6, %v283_v52, 0.0 }
  0xa4   :  { %v219_v50 = vadd.f32 %v218_v47, %v181_v45  ;;  %v289_v61 = vadd.f32 %v288_v57, %v287_v59 }
  0xa8   :  { %v276_v51 = vpop.f32.mrf.mxu2 }
  0xa9   :  { %v284_v55 = vadd.f32 %v276_v51, %v219_v50 }
  0xab   :  { %v184_v53 = vpop.f32.mrf.mxu0  ;;  %v221_v56 = vpop.f32.mrf.mxu1  ;;  %v290_v60 = vsel %vm286_vm6, %v284_v55, 0.0 }
  0xac   :  { %v222_v58 = vadd.f32 %v221_v56, %v184_v53  ;;  %v291_v0 = vadd.f32 %v290_v60, %v289_v61  ;;  %v448_v53 = vld [vmem:[%s1231_s2] sm:$0xff]  ;;  %v521_v60 = vld [vmem:[%s1233_s5 + $0x78] sm:$0xff]  ;;  %v520_v61 = vld [vmem:[%s1233_s5 + $0x70] sm:$0xff] }
  0xad   :  { %522 = vmatpush.msrb.mxu1 %v521_v60 }
  0xaf   :  { %523 = vmatpush.msrb.mxu1 %v520_v61 }
  0xb0   :  { %v279_v62 = vpop.f32.mrf.mxu2 }
  0xb1   :  { %v285_v63 = vadd.f32 %v279_v62, %v222_v58  ;;  %v519_v62 = vld [vmem:[%s1233_s5 + $0x68] sm:$0xff] }
  0xb2   :  { %524 = vmatpush.msrb.mxu1 %v519_v62 }
  0xb3   :  { %v292_v1 = vsel %vm286_vm6, %v285_v63, 0.0 }
  0xb4   :  { %v293_v2 = vadd.f32 %v292_v1, %v291_v0  ;;  %v517_v0 = vld [vmem:[%s1233_s5 + $0x58] sm:$0xff]  ;;  %v516_v1 = vld [vmem:[%s1233_s5 + $0x50] sm:$0xff] }
  0xb6   :  { %v294_v3 = vrot.slane %v293_v2, 4 }
  0xb8   :  { %v295_v4 = vadd.f32 %v294_v3, %v293_v2  ;;  %v515_v2 = vld [vmem:[%s1233_s5 + $0x48] sm:$0xff]  ;;  %v514_v3 = vld [vmem:[%s1233_s5 + $0x40] sm:$0xff] }
  0xba   :  { %v296_v5 = vrot.slane %v295_v4, 2 }
  0xbc   :  { %v297_v6 = vadd.f32 %v296_v5, %v295_v4  ;;  %v513_v4 = vld [vmem:[%s1233_s5 + $0x38] sm:$0xff]  ;;  %v512_v5 = vld [vmem:[%s1233_s5 + $0x30] sm:$0xff] }
  0xbe   :  { %v298_v7 = vrot.slane %v297_v6, 1 }
  0xc0   :  { %v299_v8 = vadd.f32 %v298_v7, %v297_v6  ;;  %v511_v6 = vld [vmem:[%s1233_s5 + $0x28] sm:$0xff]  ;;  %v510_v7 = vld [vmem:[%s1233_s5 + $0x20] sm:$0xff] }
  0xc2   :  { %797 = vmatmul.msk.f32.vlgmr.msra.gmra.mxu3 %vm286_vm6, %v299_v8  ;;  %v509_v8 = vld [vmem:[%s1233_s5 + $0x18] sm:$0xff] }
  0xc3   :  { %394 = vmatpush.msra.mxu3 %v307_v32 }
  0xc5   :  { %395 = vmatpush.msra.mxu3 %v306_v34  ;;  %v455_v34 = vld [vmem:[%s1231_s2 + $0x38] sm:$0xff] }
  0xc6   :  { %476 = vmatpush.msrb.mxu0 %v455_v34 }
  0xc7   :  { %396 = vmatpush.msra.mxu3 %v305_v35  ;;  %v454_v35 = vld [vmem:[%s1231_s2 + $0x30] sm:$0xff] }
  0xc8   :  { %477 = vmatpush.msrb.mxu0 %v454_v35 }
  0xc9   :  { %397 = vmatpush.msra.mxu3 %v304_v37  ;;  %v452_v37 = vld [vmem:[%s1231_s2 + $0x20] sm:$0xff] }
  0xca   :  { %478 = vmatpush.msrb.mxu0 %v453_v36 }
  0xcb   :  { %398 = vmatpush.msra.mxu3 %v303_v39 }
  0xcc   :  { %479 = vmatpush.msrb.mxu0 %v452_v37 }
  0xcd   :  { %399 = vmatpush.msra.mxu3 %v302_v40 }
  0xce   :  { %480 = vmatpush.msrb.mxu0 %v451_v38 }
  0xcf   :  { %400 = vmatpush.msra.mxu3 %v301_v42 }
  0xd0   :  { %481 = vmatpush.msrb.mxu0 %v450_v41 }
  0xd1   :  { %401 = vmatpush.msra.mxu3 %v300_v43  ;;  %v449_v43 = vld [vmem:[%s1231_s2 + $0x8] sm:$0xff] }
  0xd2   :  { %482 = vmatpush.msrb.mxu0 %v449_v43 }
  0xd4   :  { %483 = vmatpush.msrb.mxu0 %v448_v53 }
 0x145   :  { %v328_v9 = vpop.f32.mrf.mxu3 }
 0x146   :  { %v331_v10 = vmul.f32 0.001953125, %v328_v9 }
 0x148   :  { %799 = vmatmul.msk.f32.vlgmr.msrb.gmra.mxu3 %vm333_vm7, %v331_v10  ;;  %v508_v10 = vld [vmem:[%s1233_s5 + $0x10] sm:$0xff] }
 0x149   :  { %801 = vmatpush.msk.msrb.mxu3 %vm337_vm5, %v332_v46 }
 0x1cb   :  { %v358_v11 = vpop.f32.mrf.mxu3 }
 0x1cc   :  { %v361_v12 = vperm.slane %v358_v11, 0  ;;  %v507_v11 = vld [vmem:[%s1233_s5 + $0x8] sm:$0xff] }
 0x1ce   :  { %v362_v13 = vsub.f32 %v282_v54, %v361_v12  ;;  %v363_v14 = vsub.f32 %v283_v52, %v361_v12  ;;  %v364_v15 = vsub.f32 %v284_v55, %v361_v12  ;;  %v365_v16 = vsub.f32 %v285_v63, %v361_v12  ;;  %v518_v63 = vld [vmem:[%s1233_s5 + $0x60] sm:$0xff] }
 0x1cf   :  { %525 = vmatpush.msrb.mxu1 %v518_v63  ;;  %v506_v12 = vld [vmem:[%s1233_s5] sm:$0xff] }
 0x1d0   :  { %v366_v17 = vmul.f32 %v362_v13, %v362_v13  ;;  %v367_v18 = vmul.f32 %v363_v14, %v363_v14  ;;  %v368_v20 = vmul.f32 %v364_v15, %v364_v15  ;;  %v369_v21 = vmul.f32 %v365_v16, %v365_v16 }
 0x1d1   :  { %526 = vmatpush.msrb.mxu1 %v517_v0 }
 0x1d2   :  { %v370_v22 = vsel %vm286_vm6, %v366_v17, 0.0  ;;  %v371_v23 = vsel %vm286_vm6, %v367_v18, 0.0  ;;  %v373_v25 = vsel %vm286_vm6, %v368_v20, 0.0  ;;  %v375_v19 = vsel %vm286_vm6, %v369_v21, 0.0 }
 0x1d3   :  { %v372_v24 = vadd.f32 %v371_v23, %v370_v22  ;;  %527 = vmatpush.msrb.mxu1 %v516_v1 }
 0x1d5   :  { %v374_v26 = vadd.f32 %v373_v25, %v372_v24  ;;  %528 = vmatpush.msrb.mxu1 %v515_v2 }
 0x1d7   :  { %v376_v27 = vadd.f32 %v375_v19, %v374_v26  ;;  %529 = vmatpush.msrb.mxu1 %v514_v3 }
 0x1d9   :  { %v377_v28 = vrot.slane %v376_v27, 4  ;;  %530 = vmatpush.msrb.mxu1 %v513_v4 }
 0x1db   :  { %v378_v29 = vadd.f32 %v377_v28, %v376_v27  ;;  %531 = vmatpush.msrb.mxu1 %v512_v5 }
 0x1dd   :  { %v379_v30 = vrot.slane %v378_v29, 2  ;;  %532 = vmatpush.msrb.mxu1 %v511_v6 }
 0x1df   :  { %v380_v31 = vadd.f32 %v379_v30, %v378_v29  ;;  %533 = vmatpush.msrb.mxu1 %v510_v7 }
 0x1e1   :  { %v381_v32 = vrot.slane %v380_v31, 1  ;;  %534 = vmatpush.msrb.mxu1 %v509_v8 }
 0x1e3   :  { %v382_v33 = vadd.f32 %v381_v32, %v380_v31  ;;  %535 = vmatpush.msrb.mxu1 %v508_v10 }
 0x1e5   :  { %800 = vmatmul.msk.f32.vlgmr.msra.gmra.mxu3 %vm286_vm6, %v382_v33  ;;  %536 = vmatpush.msrb.mxu1 %v507_v11 }
 0x1e6   :  { %586 = vmatpush.msra.mxu3 %v521_v60 }
 0x1e7   :  { %537 = vmatpush.msrb.mxu1 %v506_v12 }
 0x1e8   :  { %587 = vmatpush.msra.mxu3 %v520_v61 }
 0x1ea   :  { %588 = vmatpush.msra.mxu3 %v519_v62 }
 0x1ec   :  { %589 = vmatpush.msra.mxu3 %v518_v63 }
 0x1ee   :  { %590 = vmatpush.msra.mxu3 %v517_v0 }
 0x1f0   :  { %591 = vmatpush.msra.mxu3 %v516_v1 }
 0x1f2   :  { %592 = vmatpush.msra.mxu3 %v515_v2 }
 0x1f4   :  { %593 = vmatpush.msra.mxu3 %v514_v3 }
 0x1f6   :  { %594 = vmatpush.msra.mxu3 %v513_v4 }
 0x1f8   :  { %595 = vmatpush.msra.mxu3 %v512_v5 }
 0x1fa   :  { %596 = vmatpush.msra.mxu3 %v511_v6 }
 0x1fc   :  { %597 = vmatpush.msra.mxu3 %v510_v7 }
 0x1fe   :  { %598 = vmatpush.msra.mxu3 %v509_v8 }
 0x200   :  { %599 = vmatpush.msra.mxu3 %v508_v10 }
 0x202   :  { %600 = vmatpush.msra.mxu3 %v507_v11 }
 0x204   :  { %601 = vmatpush.msra.mxu3 %v506_v12 }
 0x268   :  { %v403_v39 = vpop.f32.mrf.mxu3 }
 0x269   :  { %v406_v40 = vmul.f32 0.001953125, %v403_v39 }
 0x26b   :  { %v408_v42 = vadd.f32 1e-05, %v406_v40 }
 0x26d   :  { %814 = vrsqrt.f32 %v408_v42  ;;  %vm415_vm9 = vweird.f32 %v408_v42 }
 0x273   :  { %v815_v44 = vpop.eup %814 }
 0x274   :  { %v410_v45 = vmul.f32 %v815_v44, %v408_v42  ;;  %vm416_vm8 = vweird.f32 %v815_v44 }
 0x275   :  { %vm417_vm10 = vmor %vm415_vm9, %vm416_vm8 }
 0x276   :  { %v411_v46 = vmul.f32 %v815_v44, %v410_v45 }
 0x278   :  { %v412_v47 = vmul.f32 0.5, %v411_v46 }
 0x27a   :  { %v413_v48 = vsub.f32 1.5, %v412_v47  ;;  %v643_v47 = vld [vmem:[%s1235_s9] sm:$0x1] }
 0x27c   :  { %v414_v50 = vmul.f32 %v815_v44, %v413_v48 }
 0x27e   :  { %v418_v51 = vsel %vm417_vm10, %v815_v44, %v414_v50 }
 0x27f   :  { %v419_v52 = vmul.f32 %v418_v51, %v407_v49 }
 0x281   :  { %802 = vmatmul.msk.f32.vlgmr.msrb.gmra.mxu3 %vm333_vm7, %v419_v52 }
 0x304   :  { %v440_v54 = vpop.f32.mrf.mxu3 }
 0x305   :  { %v443_v55 = vperm.slane %v440_v54, 0 }
 0x307   :  { %v444_v56 = vmul.f32 %v443_v55, %v362_v13  ;;  %v445_v57 = vmul.f32 %v443_v55, %v363_v14  ;;  %v446_v58 = vmul.f32 %v443_v55, %v364_v15  ;;  %v447_v59 = vmul.f32 %v443_v55, %v365_v16  ;;  %v543_v13 = vld [vmem:[%s1234_s6] sm:$0xff] }
 0x308   :  { %563 = vmatpush.msrb.mxu2 %v543_v13  ;;  %638 = vmatpush.msra.mxu1 %v543_v13 }
 0x309   :  { %803 = vmatmul.msk.f32.vlgmr.msrb.gmra.mxu0 %vm286_vm6, %v444_v56  ;;  %v607_v56 = vld [vmem:[%s1236_s8] sm:$0x1] }
 0x30a   :  { %662 = vmatpush.msra.mxu2 %v543_v13 }
 0x311   :  { %804 = vmatmul.msk.f32.gmra.mxu0 %vm286_vm6, %v445_v57 }
 0x319   :  { %805 = vmatmul.msk.f32.gmra.mxu0 %vm286_vm6, %v446_v58 }
 0x321   :  { %806 = vmatmul.msk.f32.gmra.mxu0 %vm286_vm6, %v447_v59 }
 0x386   :  { %v485_v9 = vpop.f32.mrf.mxu0 }
 0x38e   :  { %v488_v14 = vpop.f32.mrf.mxu0 }
 0x38f   :  { %v497_v16 = vadd.f32 %v488_v14, %v485_v9 }
 0x396   :  { %v491_v15 = vpop.f32.mrf.mxu0 }
 0x397   :  { %v498_v17 = vadd.f32 %v497_v16, %v491_v15 }
 0x39e   :  { %v494_v18 = vpop.f32.mrf.mxu0 }
 0x39f   :  { %v499_v20 = vadd.f32 %v498_v17, %v494_v18 }
 0x3a1   :  { %v500_v21 = vrot.slane %v499_v20, 4 }
 0x3a3   :  { %v501_v22 = vadd.f32 %v500_v21, %v499_v20 }
 0x3a5   :  { %v502_v23 = vrot.slane %v501_v22, 2 }
 0x3a7   :  { %v503_v24 = vadd.f32 %v502_v23, %v501_v22 }
 0x3a9   :  { %v504_v25 = vrot.slane %v503_v24, 1 }
 0x3ab   :  { %v505_v26 = vadd.f32 %v504_v25, %v503_v24 }
 0x3ad   :  { %538 = vmatmul.f32.vlgmr.msrb.gmra.mxu1 %v505_v26 }
 0x42a   :  { %v539_v19 = vpop.f32.mrf.mxu1 }
 0x42b   :  { %v542_v27 = vmul.f32 0.001953125, %v539_v19 }
 0x42d   :  { %807 = vmatmul.msk.f32.vlgmr.msrb.gmra.mxu2 %vm544_vm11, %v542_v27 }
 0x435   :  { %809 = vmatmul.msk.f32.vlgmr.msra.gmra.mxu2 %vm544_vm11, %v643_v47 }
 0x4b0   :  { %v565_v28 = vpop.f32.mrf.mxu2 }
 0x4b1   :  { %v568_v29 = vperm.slane %v565_v28, 0 }
 0x4b3   :  { %v569_v30 = vsub.f32 %v485_v9, %v568_v29  ;;  %v570_v31 = vsub.f32 %v488_v14, %v568_v29  ;;  %v571_v32 = vsub.f32 %v491_v15, %v568_v29  ;;  %v572_v33 = vsub.f32 %v494_v18, %v568_v29 }
 0x4b5   :  { %v573_v34 = vmul.f32 %v569_v30, %v569_v30  ;;  %v574_v35 = vmul.f32 %v570_v31, %v570_v31  ;;  %v575_v36 = vmul.f32 %v571_v32, %v571_v32  ;;  %v576_v38 = vmul.f32 %v572_v33, %v572_v33 }
 0x4b7   :  { %v577_v37 = vadd.f32 %v574_v35, %v573_v34 }
 0x4b8   :  { %v664_v60 = vpop.f32.mrf.mxu2 }
 0x4b9   :  { %v578_v39 = vadd.f32 %v577_v37, %v575_v36  ;;  %v672_v63 = vperm.slane %v664_v60, 0 }
 0x4bb   :  { %v579_v40 = vadd.f32 %v578_v39, %v576_v38 }
 0x4bd   :  { %v580_v41 = vrot.slane %v579_v40, 4 }
 0x4bf   :  { %v581_v42 = vadd.f32 %v580_v41, %v579_v40 }
 0x4c1   :  { %v582_v43 = vrot.slane %v581_v42, 2 }
 0x4c3   :  { %v583_v44 = vadd.f32 %v582_v43, %v581_v42 }
 0x4c5   :  { %v584_v45 = vrot.slane %v583_v44, 1 }
 0x4c7   :  { %v585_v46 = vadd.f32 %v584_v45, %v583_v44 }
 0x4c9   :  { %602 = vmatmul.f32.vlgmr.msra.gmra.mxu3 %v585_v46 }
 0x54c   :  { %v603_v48 = vpop.f32.mrf.mxu3 }
 0x54d   :  { %v606_v49 = vmul.f32 0.001953125, %v603_v48 }
 0x54f   :  { %v608_v50 = vadd.f32 1e-05, %v606_v49 }
 0x551   :  { %816 = vrsqrt.f32 %v608_v50  ;;  %vm615_vm13 = vweird.f32 %v608_v50 }
 0x557   :  { %v817_v51 = vpop.eup %816 }
 0x558   :  { %v610_v52 = vmul.f32 %v817_v51, %v608_v50  ;;  %vm616_vm12 = vweird.f32 %v817_v51 }
 0x559   :  { %vm617_vm14 = vmor %vm615_vm13, %vm616_vm12 }
 0x55a   :  { %v611_v53 = vmul.f32 %v817_v51, %v610_v52 }
 0x55c   :  { %v612_v54 = vmul.f32 0.5, %v611_v53 }
 0x55e   :  { %v613_v55 = vsub.f32 1.5, %v612_v54 }
 0x560   :  { %v614_v57 = vmul.f32 %v817_v51, %v613_v55 }
 0x562   :  { %v618_v58 = vsel %vm617_vm14, %v817_v51, %v614_v57 }
 0x563   :  { %v619_v59 = vmul.f32 %v618_v58, %v607_v56 }
 0x565   :  { %808 = vmatmul.msk.f32.vlgmr.msra.gmra.mxu1 %vm544_vm11, %v619_v59 }
 0x5e2   :  { %v640_v61 = vpop.f32.mrf.mxu1 }
 0x5e3   :  { %v667_v62 = vperm.slane %v640_v61, 0 }
 0x5e5   :  { %v668_v0 = vmul.f32 %v667_v62, %v569_v30  ;;  %v669_v1 = vmul.f32 %v667_v62, %v570_v31  ;;  %v670_v2 = vmul.f32 %v667_v62, %v571_v32  ;;  %v671_v3 = vmul.f32 %v667_v62, %v572_v33 }
 0x5e7   :  { %v1182_v4 = vadd.f32 %v672_v63, %v668_v0  ;;  %v1184_v5 = vadd.f32 %v672_v63, %v669_v1  ;;  %v1186_v6 = vadd.f32 %v672_v63, %v670_v2  ;;  %v1188_v7 = vadd.f32 %v672_v63, %v671_v3 }
 0x5e9   :  { %v810_v8 = vmul.f32 -1.442695, %v1182_v4  ;;  %v811_v9 = vmul.f32 -1.442695, %v1184_v5  ;;  %v812_v10 = vmul.f32 -1.442695, %v1186_v6 }
 0x5ea   :  { %v813_v11 = vmul.f32 -1.442695, %v1188_v7 }
 0x5eb   :  { %818 = vpow2.f32 %v810_v8 }
 0x5ec   :  { %820 = vpow2.f32 %v811_v9 }
 0x5ed   :  { %822 = vpow2.f32 %v812_v10 }
 0x5ee   :  { %824 = vpow2.f32 %v813_v11 }
 0x5f1   :  { %v819_v12 = vpop.eup %818 }
 0x5f2   :  { %v821_v13 = vpop.eup %820  ;;  %v689_v14 = vadd.f32 1.0, %v819_v12 }
 0x5f3   :  { %v823_v15 = vpop.eup %822  ;;  %v690_v16 = vadd.f32 1.0, %v821_v13 }
 0x5f4   :  { %v825_v17 = vpop.eup %824  ;;  %v691_v18 = vadd.f32 1.0, %v823_v15  ;;  %826 = vrcp.f32 %v689_v14  ;;  %v702_v21 = vand.u32 2147483647, %v689_v14  ;;  %v704_v22 = vand.u32 2147483648, %v689_v14 }
 0x5f5   :  { %v692_v20 = vadd.f32 1.0, %v825_v17  ;;  %828 = vrcp.f32 %v690_v16  ;;  %vm698_vm15 = vweird.f32 %v689_v14  ;;  %vm713_vm0 = vweird.f32 %v690_v16 }
 0x5f6   :  { %830 = vrcp.f32 %v691_v18  ;;  %v717_v27 = vand.u32 2147483647, %v690_v16  ;;  %v719_v28 = vand.u32 2147483648, %v690_v16  ;;  %vm1194_vm1 = vcmp.eq.f32.partialorder %v702_v21, 8.507059e+37 }
 0x5f7   :  { %832 = vrcp.f32 %v692_v20  ;;  %v705_v31 = vor.u32 1.1754944e-38, %v704_v22  ;;  %vm728_vm2 = vweird.f32 %v691_v18  ;;  %v732_v35 = vand.u32 2147483647, %v691_v18 }
 0x5f8   :  { %v734_v36 = vand.u32 2147483648, %v691_v18  ;;  %vm1198_vm5 = vcmp.eq.f32.partialorder %v717_v27, 8.507059e+37  ;;  %v720_v42 = vor.u32 1.1754944e-38, %v719_v28  ;;  %vm743_vm8 = vweird.f32 %v692_v20 }
 0x5f9   :  { %v747_v47 = vand.u32 2147483647, %v692_v20  ;;  %v749_v48 = vand.u32 2147483648, %v692_v20  ;;  %vm733_vm12 = vcmp.eq.f32.partialorder %v732_v35, 8.507059e+37 }
 0x5fa   :  { %v827_v23 = vpop.eup %826  ;;  %v735_v54 = vor.u32 1.1754944e-38, %v734_v36 }
 0x5fb   :  { %v829_v24 = vpop.eup %828  ;;  %v694_v25 = vmul.f32 %v827_v23, %v689_v14  ;;  %vm699_vm3 = vweird.f32 %v827_v23  ;;  %v750_v60 = vor.u32 1.1754944e-38, %v749_v48  ;;  %vm748_vm14 = vcmp.eq.f32.partialorder %v747_v47, 8.507059e+37 }
 0x5fc   :  { %v831_v26 = vpop.eup %830  ;;  %v709_v19 = vmul.f32 %v829_v24, %v690_v16  ;;  %vm714_vm4 = vweird.f32 %v829_v24  ;;  %vm700_vm7 = vmor %vm698_vm15, %vm699_vm3 }
 0x5fd   :  { %v695_v29 = vsub.f32 1.0, %v694_v25  ;;  %v724_v32 = vmul.f32 %v831_v26, %v691_v18  ;;  %v833_v33 = vpop.eup %832  ;;  %vm729_vm6 = vweird.f32 %v831_v26  ;;  %vm715_vm9 = vmor %vm713_vm0, %vm714_vm4 }
 0x5fe   :  { %v710_v34 = vsub.f32 1.0, %v709_v19  ;;  %v739_v39 = vmul.f32 %v833_v33, %v692_v20  ;;  %vm744_vm10 = vweird.f32 %v833_v33  ;;  %vm730_vm11 = vmor %vm728_vm2, %vm729_vm6 }
 0x5ff   :  { %v696_v37 = vmul.f32 %v827_v23, %v695_v29  ;;  %v725_v38 = vsub.f32 1.0, %v724_v32  ;;  %vm745_vm13 = vmor %vm743_vm8, %vm744_vm10 }
 0x600   :  { %v711_v40 = vmul.f32 %v829_v24, %v710_v34  ;;  %v740_v45 = vsub.f32 1.0, %v739_v39 }
 0x601   :  { %v697_v43 = vadd.f32 %v827_v23, %v696_v37  ;;  %v726_v44 = vmul.f32 %v831_v26, %v725_v38 }
 0x602   :  { %v712_v46 = vadd.f32 %v829_v24, %v711_v40  ;;  %v741_v51 = vmul.f32 %v833_v33, %v740_v45 }
 0x603   :  { %v701_v49 = vsel %vm700_vm7, %v827_v23, %v697_v43  ;;  %v727_v50 = vadd.f32 %v831_v26, %v726_v44 }
 0x604   :  { %v706_v52 = vsel %vm1194_vm1, %v705_v31, %v701_v49  ;;  %v716_v53 = vsel %vm715_vm9, %v829_v24, %v712_v46  ;;  %v742_v57 = vadd.f32 %v833_v33, %v741_v51 }
 0x605   :  { %v721_v55 = vsel %vm1198_vm5, %v720_v42, %v716_v53  ;;  %v731_v56 = vsel %vm730_vm11, %v831_v26, %v727_v50  ;;  %v753_v58 = vmul.f32 %v706_v52, %v1182_v4 }
 0x606   :  { %v736_v59 = vsel %vm733_vm12, %v735_v54, %v731_v56  ;;  %v754_v61 = vmul.f32 %v721_v55, %v1184_v5  ;;  %v746_v62 = vsel %vm745_vm13, %v833_v33, %v742_v57 }
 0x607   :  { %v755_v63 = vmul.f32 %v736_v59, %v1186_v6  ;;  %757 = vst [vmem:[%s1237_s10] sm:$0xff] %v753_v58  ;;  %v751_v0 = vsel %vm748_vm14, %v750_v60, %v746_v62 }
 0x608   :  { %758 = vst [vmem:[%s1237_s10 + $0x8] sm:$0xff] %v754_v61  ;;  %v756_v1 = vmul.f32 %v751_v0, %v1188_v7 }
 0x609   :  { %759 = vst [vmem:[%s1237_s10 + $0x10] sm:$0xff] %v755_v63 }
 0x60a   :  { %760 = vst [vmem:[%s1237_s10 + $0x18] sm:$0xff] %v756_v1 }

</bundles_post_ra>
